<compile_context>
chip_gen: v7x
topology: tpu7x:2x2x1
jax: 0.10.0
libtpu: 0.0.40
codegen_flags: <defaults>
</compile_context>

<pallas_src>
import jax
import jax.numpy as jnp
from jax import lax
from jax.experimental import pallas as pl
from jax.experimental.pallas import tpu as pltpu

TILE = 256   # batch samples per grid step (sweep 256-512; ~20 MiB VMEM/step)


def _round_up(x, m):
    return ((x + m - 1) // m) * m


# ---------------------------------------------------------------------------
# Fused kernel: conv1..conv4 (+LeakyReLU) -> Linear(128, 1) -> tanh.
# Processes one batch tile of Np samples per grid step.
# ---------------------------------------------------------------------------
def _fused_value_net_kernel(x_ref, w1_ref, b1_ref, w2_ref, b2_ref,
                            w3_ref, b3_ref, w4_ref, b4_ref,
                            w5_ref, b5_ref, o_ref):
    def leaky(v):
        return jnp.where(v >= 0, v, 0.01 * v)

    S1, Np, K1 = x_ref.shape                       # (36, tile, 27)

    # conv1: all 36 output positions x Np samples in ONE K=27 matmul.
    x2d = x_ref[...].reshape(S1 * Np, K1)          # merge leading dims only
    a = jnp.dot(x2d, w1_ref[...], preferred_element_type=jnp.float32)
    a = leaky(a + b1_ref[...]).astype(jnp.bfloat16).reshape(6, 6, Np, 64)

    def conv(a, w_ref, b_ref, k):
        Hi, Wi, Np_, Cin = a.shape
        Cout = w_ref.shape[-1]
        Ho, Wo = Hi - k + 1, Wi - k + 1
        acc = jnp.zeros((Ho * Wo * Np_, Cout), jnp.float32)
        # TODO(synk): an (S, Np, C) working layout with per-output-row
        # contiguous slices would avoid the strided slice copies per tap.
        for di in range(k):
            for dj in range(k):
                patch = a[di:di + Ho, dj:dj + Wo].reshape(Ho * Wo * Np_, Cin)
                acc = acc + jnp.dot(patch, w_ref[di * k + dj],
                                    preferred_element_type=jnp.float32)
        acc = leaky(acc + b_ref[...])
        return acc.astype(jnp.bfloat16).reshape(Ho, Wo, Np_, Cout)

    a = conv(a, w2_ref, b2_ref, 3)                 # (4, 4, Np, 64)
    a = conv(a, w3_ref, b3_ref, 2)                 # (3, 3, Np, 128)

    # conv4 collapses 3x3 -> 1x1: index taps directly, no slicing/reshape.
    acc = jnp.zeros((Np, 128), jnp.float32)
    for di in range(3):
        for dj in range(3):
            acc = acc + jnp.dot(a[di, dj], w4_ref[di * 3 + dj],
                                preferred_element_type=jnp.float32)
    feat = leaky(acc + b4_ref[...]).astype(jnp.bfloat16)    # (Np, 128)

    # Linear(128, 1) + tanh, batch packed into the lane dimension:
    # (1, 128) contracted against (Np, 128) -> lane-dense (1, Np) row.
    out_row = lax.dot_general(w5_ref[...], feat,
                              dimension_numbers=(((1,), (1,)), ((), ())),
                              preferred_element_type=jnp.float32)
    o_ref[...] = jnp.tanh(out_row + b5_ref[...])


# ---------------------------------------------------------------------------
# Wrapper: im2col for conv1 + batch-tiled pallas_call
# ---------------------------------------------------------------------------
def forward(params, state_nchw):
    """state_nchw: (N, 3, 8, 8) f32 -> (N, 1) f32 (tanh of the value)."""
    N = state_nchw.shape[0]
    tile = TILE if N >= TILE else max(8, _round_up(N, 8))
    n_pad = _round_up(N, tile)
    grid = (n_pad // tile,)

    # NCHW -> NHWC, then im2col for conv1.  Patch column order (di, dj, c),
    # row order s = i*6 + j.  Layout (36, Np, 27) so the in-kernel reshape
    # only merges leading dims (Np is a multiple of 8).
    x = jnp.transpose(state_nchw, (0, 2, 3, 1)).astype(jnp.float32)
    taps = [x[:, di:di + 6, dj:dj + 6, :] for di in range(3) for dj in range(3)]
    p = jnp.stack(taps, axis=3).reshape(N, 36, 27)           # (N, 36, 27)
    p = jnp.transpose(p, (1, 0, 2))                          # (36, N, 27)
    p = jnp.pad(p, ((0, 0), (0, n_pad - N), (0, 0))).astype(jnp.bfloat16)

    bf = jnp.bfloat16
    args = (p,
            params["w1"].astype(bf), params["b1"],
            params["w2"].astype(bf), params["b2"],
            params["w3"].astype(bf), params["b3"],
            params["w4"].astype(bf), params["b4"],
            params["w5"].astype(bf), params["b5"])

    def const_spec(shape):                         # weights: resident, no re-DMA
        nd = len(shape)
        return pl.BlockSpec(shape, lambda i, _nd=nd: (0,) * _nd)

    in_specs = [pl.BlockSpec((36, tile, 27), lambda i: (0, i, 0))]
    in_specs += [const_spec(a.shape) for a in args[1:]]

    out = pl.pallas_call(
        _fused_value_net_kernel,
        out_shape=jax.ShapeDtypeStruct((1, n_pad), jnp.float32),
        grid=grid,
        in_specs=in_specs,
        out_specs=pl.BlockSpec((1, tile), lambda i: (0, i)),
        compiler_params=pltpu.CompilerParams(
            dimension_semantics=("parallel",),       # v7x: shard batch over 2 TCs
            vmem_limit_bytes=48 * 1024 * 1024),      # < v7x 64 MiB physical
    )(*args)

    return out[0, :N].reshape(N, 1)


forward = jax.jit(forward)


# ---------------------------------------------------------------------------
# Deterministic synthetic parameters (kernel layout; see weight-layout note).
#   conv w: (k*k, Cin, Cout), tap order di*k+dj; conv1 flattened to (27, 64).
#   linear: xavier_uniform weight (1, 128), zero bias (weights_init_).
# ---------------------------------------------------------------------------
def init_params(key):
    ks = jax.random.split(key, 9)

    def conv_w(k_, kk, cin, cout):
        bound = 1.0 / jnp.sqrt(kk * kk * cin)
        return jax.random.uniform(k_, (kk * kk, cin, cout), jnp.float32,
                                  -bound, bound)

    def conv_b(k_, kk, cin, cout):
        bound = 1.0 / jnp.sqrt(kk * kk * cin)
        return jax.random.uniform(k_, (1, cout), jnp.float32, -bound, bound)

    p = {}
    p["w1"] = conv_w(ks[0], 3, 3, 64).reshape(27, 64)   # col = di*9 + dj*3 + c
    p["b1"] = conv_b(ks[1], 3, 3, 64)
    p["w2"] = conv_w(ks[2], 3, 64, 64);   p["b2"] = conv_b(ks[3], 3, 64, 64)
    p["w3"] = conv_w(ks[4], 2, 64, 128);  p["b3"] = conv_b(ks[5], 2, 64, 128)
    p["w4"] = conv_w(ks[6], 3, 128, 128); p["b4"] = conv_b(ks[7], 3, 128, 128)

    limit = jnp.sqrt(6.0 / (128 + 1))                   # xavier_uniform, gain=1
    p["w5"] = jax.random.uniform(ks[8], (1, 128), jnp.float32, -limit, limit)
    p["b5"] = jnp.zeros((1, 1), jnp.float32)            # constant_(bias, 0)
    return p


# ---------------------------------------------------------------------------
# Plain-JAX f32 reference (lax.conv) for correctness check
# ---------------------------------------------------------------------------
def forward_ref(params, state_nchw):
    def conv(x, w_hwio, b, cout):
        y = lax.conv_general_dilated(
            x, w_hwio, window_strides=(1, 1), padding="VALID",
            dimension_numbers=("NHWC", "HWIO", "NHWC"))
        y = y + b.reshape(1, 1, 1, cout)
        return jnp.where(y >= 0, y, 0.01 * y)

    x = jnp.transpose(state_nchw, (0, 2, 3, 1))
    x = conv(x, params["w1"].reshape(3, 3, 3, 64), params["b1"], 64)
    x = conv(x, params["w2"].reshape(3, 3, 64, 64), params["b2"], 64)
    x = conv(x, params["w3"].reshape(2, 2, 64, 128), params["b3"], 128)
    x = conv(x, params["w4"].reshape(3, 3, 128, 128), params["b4"], 128)
    feat = x.reshape(x.shape[0], 128)
    y = feat @ params["w5"].T + params["b5"][0]
    return jnp.tanh(y)


if __name__ == "__main__":
    key = jax.random.PRNGKey(0)
    pkey, xkey = jax.random.split(key)
    params = init_params(pkey)

    # batch=2, channels=3, spatial=8x8 (the size the module implies).
    state = jax.random.normal(xkey, (2, 3, 8, 8), jnp.float32)

    out = jax.block_until_ready(forward(params, state))
    assert out.shape == (2, 1), out.shape

    ref = jax.block_until_ready(forward_ref(params, state))
    # bf16 matmul inputs (f32 accumulation) -> loosened tolerance.
    if not jnp.allclose(out, ref, atol=3e-2, rtol=3e-2):
        raise AssertionError(
            f"Pallas output does not match reference: {out} vs {ref}")

    print("KERNEL_OK")
</pallas_src>

<mosaic_0001>
module attributes {stable_mosaic.version = 11 : i64} {
  func.func @_fused_value_net_kernel(%arg0: i32, %arg1: memref<36x8x27xbf16, #tpu.memory_space<vmem>>, %arg2: memref<27x64xbf16, #tpu.memory_space<vmem>>, %arg3: memref<1x64xf32, #tpu.memory_space<vmem>>, %arg4: memref<9x64x64xbf16, #tpu.memory_space<vmem>>, %arg5: memref<1x64xf32, #tpu.memory_space<vmem>>, %arg6: memref<4x64x128xbf16, #tpu.memory_space<vmem>>, %arg7: memref<1x128xf32, #tpu.memory_space<vmem>>, %arg8: memref<9x128x128xbf16, #tpu.memory_space<vmem>>, %arg9: memref<1x128xf32, #tpu.memory_space<vmem>>, %arg10: memref<1x128xbf16, #tpu.memory_space<vmem>>, %arg11: memref<1x1xf32, #tpu.memory_space<vmem>>, %arg12: memref<1x8xf32, #tpu.memory_space<vmem>>) attributes {dimension_semantics = [#tpu.dimension_semantics<parallel>], iteration_bounds = array<i64: 1>, scalar_prefetch = 0 : i64, scratch_operands = 0 : i64, tpu.core_type = #tpu.core_type<tc>, window_params = [{transform_indices = @transform_0, window_bounds = array<i64: 36, 8, 27>}, {pipeline_mode = #tpu.pipeline_mode<synchronous>, transform_indices = @transform_1, window_bounds = array<i64: 27, 64>}, {pipeline_mode = #tpu.pipeline_mode<synchronous>, transform_indices = @transform_2, window_bounds = array<i64: 1, 64>}, {pipeline_mode = #tpu.pipeline_mode<synchronous>, transform_indices = @transform_3, window_bounds = array<i64: 9, 64, 64>}, {pipeline_mode = #tpu.pipeline_mode<synchronous>, transform_indices = @transform_4, window_bounds = array<i64: 1, 64>}, {pipeline_mode = #tpu.pipeline_mode<synchronous>, transform_indices = @transform_5, window_bounds = array<i64: 4, 64, 128>}, {pipeline_mode = #tpu.pipeline_mode<synchronous>, transform_indices = @transform_6, window_bounds = array<i64: 1, 128>}, {pipeline_mode = #tpu.pipeline_mode<synchronous>, transform_indices = @transform_7, window_bounds = array<i64: 9, 128, 128>}, {pipeline_mode = #tpu.pipeline_mode<synchronous>, transform_indices = @transform_8, window_bounds = array<i64: 1, 128>}, {pipeline_mode = #tpu.pipeline_mode<synchronous>, transform_indices = @transform_9, window_bounds = array<i64: 1, 128>}, {pipeline_mode = #tpu.pipeline_mode<synchronous>, transform_indices = @transform_10, window_bounds = array<i64: 1, 1>}, {transform_indices = @transform_11, window_bounds = array<i64: 1, 8>}]} {
    %c0 = arith.constant 0 : index
    %c0_0 = arith.constant 0 : index
    %c0_1 = arith.constant 0 : index
    %0 = vector.load %arg1[%c0, %c0_0, %c0_1] : memref<36x8x27xbf16, #tpu.memory_space<vmem>>, vector<36x8x27xbf16>
    %1 = vector.shape_cast %0 : vector<36x8x27xbf16> to vector<288x27xbf16>
    %c0_2 = arith.constant 0 : index
    %c0_3 = arith.constant 0 : index
    %2 = vector.load %arg2[%c0_2, %c0_3] : memref<27x64xbf16, #tpu.memory_space<vmem>>, vector<27x64xbf16>
    %cst = arith.constant dense<0.000000e+00> : vector<288x64xf32>
    %3 = tpu.matmul %1, %2, %cst {dimension_numbers = #tpu.dot_dimension_numbers<[1], [0], [0], [1], [0, 0, 1, 1], [], []>} : vector<288x27xbf16>, vector<27x64xbf16>, vector<288x64xf32> -> vector<288x64xf32>
    %c0_4 = arith.constant 0 : index
    %c0_5 = arith.constant 0 : index
    %4 = vector.load %arg3[%c0_4, %c0_5] : memref<1x64xf32, #tpu.memory_space<vmem>>, vector<1x64xf32>
    %5 = vector.broadcast %4 : vector<1x64xf32> to vector<288x64xf32>
    %6 = arith.addf %3, %5 : vector<288x64xf32>
    %cst_6 = arith.constant 0.000000e+00 : f32
    %7 = vector.broadcast %cst_6 : f32 to vector<288x64xf32>
    %8 = arith.cmpf oge, %6, %7 : vector<288x64xf32>
    %cst_7 = arith.constant 0.00999999977 : f32
    %9 = vector.broadcast %cst_7 : f32 to vector<288x64xf32>
    %10 = arith.mulf %9, %6 : vector<288x64xf32>
    %11 = arith.select %8, %6, %10 : vector<288x64xi1>, vector<288x64xf32>
    %12 = arith.truncf %11 : vector<288x64xf32> to vector<288x64xbf16>
    %13 = vector.shape_cast %12 : vector<288x64xbf16> to vector<6x6x8x64xbf16>
    %cst_8 = arith.constant 0.000000e+00 : f32
    %14 = vector.broadcast %cst_8 : f32 to vector<128x64xf32>
    %15 = vector.extract_strided_slice %13 {offsets = [0, 0, 0, 0], sizes = [4, 4, 8, 64], strides = [1, 1, 1, 1]} : vector<6x6x8x64xbf16> to vector<4x4x8x64xbf16>
    %16 = vector.shape_cast %15 : vector<4x4x8x64xbf16> to vector<128x64xbf16>
    %c0_9 = arith.constant 0 : index
    %c0_10 = arith.constant 0 : index
    %c0_11 = arith.constant 0 : index
    %17 = vector.load %arg4[%c0_9, %c0_10, %c0_11] : memref<9x64x64xbf16, #tpu.memory_space<vmem>>, vector<1x64x64xbf16>
    %18 = vector.shape_cast %17 : vector<1x64x64xbf16> to vector<64x64xbf16>
    %cst_12 = arith.constant dense<0.000000e+00> : vector<128x64xf32>
    %19 = tpu.matmul %16, %18, %cst_12 {dimension_numbers = #tpu.dot_dimension_numbers<[1], [0], [0], [1], [0, 0, 1, 1], [], []>} : vector<128x64xbf16>, vector<64x64xbf16>, vector<128x64xf32> -> vector<128x64xf32>
    %20 = arith.addf %14, %19 : vector<128x64xf32>
    %21 = vector.extract_strided_slice %13 {offsets = [0, 1, 0, 0], sizes = [4, 4, 8, 64], strides = [1, 1, 1, 1]} : vector<6x6x8x64xbf16> to vector<4x4x8x64xbf16>
    %22 = vector.shape_cast %21 : vector<4x4x8x64xbf16> to vector<128x64xbf16>
    %c1 = arith.constant 1 : index
    %c0_13 = arith.constant 0 : index
    %c0_14 = arith.constant 0 : index
    %23 = vector.load %arg4[%c1, %c0_13, %c0_14] : memref<9x64x64xbf16, #tpu.memory_space<vmem>>, vector<1x64x64xbf16>
    %24 = vector.shape_cast %23 : vector<1x64x64xbf16> to vector<64x64xbf16>
    %cst_15 = arith.constant dense<0.000000e+00> : vector<128x64xf32>
    %25 = tpu.matmul %22, %24, %cst_15 {dimension_numbers = #tpu.dot_dimension_numbers<[1], [0], [0], [1], [0, 0, 1, 1], [], []>} : vector<128x64xbf16>, vector<64x64xbf16>, vector<128x64xf32> -> vector<128x64xf32>
    %26 = arith.addf %20, %25 : vector<128x64xf32>
    %27 = vector.extract_strided_slice %13 {offsets = [0, 2, 0, 0], sizes = [4, 4, 8, 64], strides = [1, 1, 1, 1]} : vector<6x6x8x64xbf16> to vector<4x4x8x64xbf16>
    %28 = vector.shape_cast %27 : vector<4x4x8x64xbf16> to vector<128x64xbf16>
    %c2 = arith.constant 2 : index
    %c0_16 = arith.constant 0 : index
    %c0_17 = arith.constant 0 : index
    %29 = vector.load %arg4[%c2, %c0_16, %c0_17] : memref<9x64x64xbf16, #tpu.memory_space<vmem>>, vector<1x64x64xbf16>
    %30 = vector.shape_cast %29 : vector<1x64x64xbf16> to vector<64x64xbf16>
    %cst_18 = arith.constant dense<0.000000e+00> : vector<128x64xf32>
    %31 = tpu.matmul %28, %30, %cst_18 {dimension_numbers = #tpu.dot_dimension_numbers<[1], [0], [0], [1], [0, 0, 1, 1], [], []>} : vector<128x64xbf16>, vector<64x64xbf16>, vector<128x64xf32> -> vector<128x64xf32>
    %32 = arith.addf %26, %31 : vector<128x64xf32>
    %33 = vector.extract_strided_slice %13 {offsets = [1, 0, 0, 0], sizes = [4, 4, 8, 64], strides = [1, 1, 1, 1]} : vector<6x6x8x64xbf16> to vector<4x4x8x64xbf16>
    %34 = vector.shape_cast %33 : vector<4x4x8x64xbf16> to vector<128x64xbf16>
    %c3 = arith.constant 3 : index
    %c0_19 = arith.constant 0 : index
    %c0_20 = arith.constant 0 : index
    %35 = vector.load %arg4[%c3, %c0_19, %c0_20] : memref<9x64x64xbf16, #tpu.memory_space<vmem>>, vector<1x64x64xbf16>
    %36 = vector.shape_cast %35 : vector<1x64x64xbf16> to vector<64x64xbf16>
    %cst_21 = arith.constant dense<0.000000e+00> : vector<128x64xf32>
    %37 = tpu.matmul %34, %36, %cst_21 {dimension_numbers = #tpu.dot_dimension_numbers<[1], [0], [0], [1], [0, 0, 1, 1], [], []>} : vector<128x64xbf16>, vector<64x64xbf16>, vector<128x64xf32> -> vector<128x64xf32>
    %38 = arith.addf %32, %37 : vector<128x64xf32>
    %39 = vector.extract_strided_slice %13 {offsets = [1, 1, 0, 0], sizes = [4, 4, 8, 64], strides = [1, 1, 1, 1]} : vector<6x6x8x64xbf16> to vector<4x4x8x64xbf16>
    %40 = vector.shape_cast %39 : vector<4x4x8x64xbf16> to vector<128x64xbf16>
    %c4 = arith.constant 4 : index
    %c0_22 = arith.constant 0 : index
    %c0_23 = arith.constant 0 : index
    %41 = vector.load %arg4[%c4, %c0_22, %c0_23] : memref<9x64x64xbf16, #tpu.memory_space<vmem>>, vector<1x64x64xbf16>
    %42 = vector.shape_cast %41 : vector<1x64x64xbf16> to vector<64x64xbf16>
    %cst_24 = arith.constant dense<0.000000e+00> : vector<128x64xf32>
    %43 = tpu.matmul %40, %42, %cst_24 {dimension_numbers = #tpu.dot_dimension_numbers<[1], [0], [0], [1], [0, 0, 1, 1], [], []>} : vector<128x64xbf16>, vector<64x64xbf16>, vector<128x64xf32> -> vector<128x64xf32>
    %44 = arith.addf %38, %43 : vector<128x64xf32>
    %45 = vector.extract_strided_slice %13 {offsets = [1, 2, 0, 0], sizes = [4, 4, 8, 64], strides = [1, 1, 1, 1]} : vector<6x6x8x64xbf16> to vector<4x4x8x64xbf16>
    %46 = vector.shape_cast %45 : vector<4x4x8x64xbf16> to vector<128x64xbf16>
    %c5 = arith.constant 5 : index
    %c0_25 = arith.constant 0 : index
    %c0_26 = arith.constant 0 : index
    %47 = vector.load %arg4[%c5, %c0_25, %c0_26] : memref<9x64x64xbf16, #tpu.memory_space<vmem>>, vector<1x64x64xbf16>
    %48 = vector.shape_cast %47 : vector<1x64x64xbf16> to vector<64x64xbf16>
    %cst_27 = arith.constant dense<0.000000e+00> : vector<128x64xf32>
    %49 = tpu.matmul %46, %48, %cst_27 {dimension_numbers = #tpu.dot_dimension_numbers<[1], [0], [0], [1], [0, 0, 1, 1], [], []>} : vector<128x64xbf16>, vector<64x64xbf16>, vector<128x64xf32> -> vector<128x64xf32>
    %50 = arith.addf %44, %49 : vector<128x64xf32>
    %51 = vector.extract_strided_slice %13 {offsets = [2, 0, 0, 0], sizes = [4, 4, 8, 64], strides = [1, 1, 1, 1]} : vector<6x6x8x64xbf16> to vector<4x4x8x64xbf16>
    %52 = vector.shape_cast %51 : vector<4x4x8x64xbf16> to vector<128x64xbf16>
    %c6 = arith.constant 6 : index
    %c0_28 = arith.constant 0 : index
    %c0_29 = arith.constant 0 : index
    %53 = vector.load %arg4[%c6, %c0_28, %c0_29] : memref<9x64x64xbf16, #tpu.memory_space<vmem>>, vector<1x64x64xbf16>
    %54 = vector.shape_cast %53 : vector<1x64x64xbf16> to vector<64x64xbf16>
    %cst_30 = arith.constant dense<0.000000e+00> : vector<128x64xf32>
    %55 = tpu.matmul %52, %54, %cst_30 {dimension_numbers = #tpu.dot_dimension_numbers<[1], [0], [0], [1], [0, 0, 1, 1], [], []>} : vector<128x64xbf16>, vector<64x64xbf16>, vector<128x64xf32> -> vector<128x64xf32>
    %56 = arith.addf %50, %55 : vector<128x64xf32>
    %57 = vector.extract_strided_slice %13 {offsets = [2, 1, 0, 0], sizes = [4, 4, 8, 64], strides = [1, 1, 1, 1]} : vector<6x6x8x64xbf16> to vector<4x4x8x64xbf16>
    %58 = vector.shape_cast %57 : vector<4x4x8x64xbf16> to vector<128x64xbf16>
    %c7 = arith.constant 7 : index
    %c0_31 = arith.constant 0 : index
    %c0_32 = arith.constant 0 : index
    %59 = vector.load %arg4[%c7, %c0_31, %c0_32] : memref<9x64x64xbf16, #tpu.memory_space<vmem>>, vector<1x64x64xbf16>
    %60 = vector.shape_cast %59 : vector<1x64x64xbf16> to vector<64x64xbf16>
    %cst_33 = arith.constant dense<0.000000e+00> : vector<128x64xf32>
    %61 = tpu.matmul %58, %60, %cst_33 {dimension_numbers = #tpu.dot_dimension_numbers<[1], [0], [0], [1], [0, 0, 1, 1], [], []>} : vector<128x64xbf16>, vector<64x64xbf16>, vector<128x64xf32> -> vector<128x64xf32>
    %62 = arith.addf %56, %61 : vector<128x64xf32>
    %63 = vector.extract_strided_slice %13 {offsets = [2, 2, 0, 0], sizes = [4, 4, 8, 64], strides = [1, 1, 1, 1]} : vector<6x6x8x64xbf16> to vector<4x4x8x64xbf16>
    %64 = vector.shape_cast %63 : vector<4x4x8x64xbf16> to vector<128x64xbf16>
    %c8 = arith.constant 8 : index
    %c0_34 = arith.constant 0 : index
    %c0_35 = arith.constant 0 : index
    %65 = vector.load %arg4[%c8, %c0_34, %c0_35] : memref<9x64x64xbf16, #tpu.memory_space<vmem>>, vector<1x64x64xbf16>
    %66 = vector.shape_cast %65 : vector<1x64x64xbf16> to vector<64x64xbf16>
    %cst_36 = arith.constant dense<0.000000e+00> : vector<128x64xf32>
    %67 = tpu.matmul %64, %66, %cst_36 {dimension_numbers = #tpu.dot_dimension_numbers<[1], [0], [0], [1], [0, 0, 1, 1], [], []>} : vector<128x64xbf16>, vector<64x64xbf16>, vector<128x64xf32> -> vector<128x64xf32>
    %68 = arith.addf %62, %67 : vector<128x64xf32>
    %c0_37 = arith.constant 0 : index
    %c0_38 = arith.constant 0 : index
    %69 = vector.load %arg5[%c0_37, %c0_38] : memref<1x64xf32, #tpu.memory_space<vmem>>, vector<1x64xf32>
    %70 = vector.broadcast %69 : vector<1x64xf32> to vector<128x64xf32>
    %71 = arith.addf %68, %70 : vector<128x64xf32>
    %cst_39 = arith.constant 0.000000e+00 : f32
    %72 = vector.broadcast %cst_39 : f32 to vector<128x64xf32>
    %73 = arith.cmpf oge, %71, %72 : vector<128x64xf32>
    %cst_40 = arith.constant 0.00999999977 : f32
    %74 = vector.broadcast %cst_40 : f32 to vector<128x64xf32>
    %75 = arith.mulf %74, %71 : vector<128x64xf32>
    %76 = arith.select %73, %71, %75 : vector<128x64xi1>, vector<128x64xf32>
    %77 = arith.truncf %76 : vector<128x64xf32> to vector<128x64xbf16>
    %78 = vector.shape_cast %77 : vector<128x64xbf16> to vector<4x4x8x64xbf16>
    %cst_41 = arith.constant 0.000000e+00 : f32
    %79 = vector.broadcast %cst_41 : f32 to vector<72x128xf32>
    %80 = vector.extract_strided_slice %78 {offsets = [0, 0, 0, 0], sizes = [3, 3, 8, 64], strides = [1, 1, 1, 1]} : vector<4x4x8x64xbf16> to vector<3x3x8x64xbf16>
    %81 = vector.shape_cast %80 : vector<3x3x8x64xbf16> to vector<72x64xbf16>
    %c0_42 = arith.constant 0 : index
    %c0_43 = arith.constant 0 : index
    %c0_44 = arith.constant 0 : index
    %82 = vector.load %arg6[%c0_42, %c0_43, %c0_44] : memref<4x64x128xbf16, #tpu.memory_space<vmem>>, vector<1x64x128xbf16>
    %83 = vector.shape_cast %82 : vector<1x64x128xbf16> to vector<64x128xbf16>
    %cst_45 = arith.constant dense<0.000000e+00> : vector<72x128xf32>
    %84 = tpu.matmul %81, %83, %cst_45 {dimension_numbers = #tpu.dot_dimension_numbers<[1], [0], [0], [1], [0, 0, 1, 1], [], []>} : vector<72x64xbf16>, vector<64x128xbf16>, vector<72x128xf32> -> vector<72x128xf32>
    %85 = arith.addf %79, %84 : vector<72x128xf32>
    %86 = vector.extract_strided_slice %78 {offsets = [0, 1, 0, 0], sizes = [3, 3, 8, 64], strides = [1, 1, 1, 1]} : vector<4x4x8x64xbf16> to vector<3x3x8x64xbf16>
    %87 = vector.shape_cast %86 : vector<3x3x8x64xbf16> to vector<72x64xbf16>
    %c1_46 = arith.constant 1 : index
    %c0_47 = arith.constant 0 : index
    %c0_48 = arith.constant 0 : index
    %88 = vector.load %arg6[%c1_46, %c0_47, %c0_48] : memref<4x64x128xbf16, #tpu.memory_space<vmem>>, vector<1x64x128xbf16>
    %89 = vector.shape_cast %88 : vector<1x64x128xbf16> to vector<64x128xbf16>
    %cst_49 = arith.constant dense<0.000000e+00> : vector<72x128xf32>
    %90 = tpu.matmul %87, %89, %cst_49 {dimension_numbers = #tpu.dot_dimension_numbers<[1], [0], [0], [1], [0, 0, 1, 1], [], []>} : vector<72x64xbf16>, vector<64x128xbf16>, vector<72x128xf32> -> vector<72x128xf32>
    %91 = arith.addf %85, %90 : vector<72x128xf32>
    %92 = vector.extract_strided_slice %78 {offsets = [1, 0, 0, 0], sizes = [3, 3, 8, 64], strides = [1, 1, 1, 1]} : vector<4x4x8x64xbf16> to vector<3x3x8x64xbf16>
    %93 = vector.shape_cast %92 : vector<3x3x8x64xbf16> to vector<72x64xbf16>
    %c2_50 = arith.constant 2 : index
    %c0_51 = arith.constant 0 : index
    %c0_52 = arith.constant 0 : index
    %94 = vector.load %arg6[%c2_50, %c0_51, %c0_52] : memref<4x64x128xbf16, #tpu.memory_space<vmem>>, vector<1x64x128xbf16>
    %95 = vector.shape_cast %94 : vector<1x64x128xbf16> to vector<64x128xbf16>
    %cst_53 = arith.constant dense<0.000000e+00> : vector<72x128xf32>
    %96 = tpu.matmul %93, %95, %cst_53 {dimension_numbers = #tpu.dot_dimension_numbers<[1], [0], [0], [1], [0, 0, 1, 1], [], []>} : vector<72x64xbf16>, vector<64x128xbf16>, vector<72x128xf32> -> vector<72x128xf32>
    %97 = arith.addf %91, %96 : vector<72x128xf32>
    %98 = vector.extract_strided_slice %78 {offsets = [1, 1, 0, 0], sizes = [3, 3, 8, 64], strides = [1, 1, 1, 1]} : vector<4x4x8x64xbf16> to vector<3x3x8x64xbf16>
    %99 = vector.shape_cast %98 : vector<3x3x8x64xbf16> to vector<72x64xbf16>
    %c3_54 = arith.constant 3 : index
    %c0_55 = arith.constant 0 : index
    %c0_56 = arith.constant 0 : index
    %100 = vector.load %arg6[%c3_54, %c0_55, %c0_56] : memref<4x64x128xbf16, #tpu.memory_space<vmem>>, vector<1x64x128xbf16>
    %101 = vector.shape_cast %100 : vector<1x64x128xbf16> to vector<64x128xbf16>
    %cst_57 = arith.constant dense<0.000000e+00> : vector<72x128xf32>
    %102 = tpu.matmul %99, %101, %cst_57 {dimension_numbers = #tpu.dot_dimension_numbers<[1], [0], [0], [1], [0, 0, 1, 1], [], []>} : vector<72x64xbf16>, vector<64x128xbf16>, vector<72x128xf32> -> vector<72x128xf32>
    %103 = arith.addf %97, %102 : vector<72x128xf32>
    %c0_58 = arith.constant 0 : index
    %c0_59 = arith.constant 0 : index
    %104 = vector.load %arg7[%c0_58, %c0_59] : memref<1x128xf32, #tpu.memory_space<vmem>>, vector<1x128xf32>
    %105 = vector.broadcast %104 : vector<1x128xf32> to vector<72x128xf32>
    %106 = arith.addf %103, %105 : vector<72x128xf32>
    %cst_60 = arith.constant 0.000000e+00 : f32
    %107 = vector.broadcast %cst_60 : f32 to vector<72x128xf32>
    %108 = arith.cmpf oge, %106, %107 : vector<72x128xf32>
    %cst_61 = arith.constant 0.00999999977 : f32
    %109 = vector.broadcast %cst_61 : f32 to vector<72x128xf32>
    %110 = arith.mulf %109, %106 : vector<72x128xf32>
    %111 = arith.select %108, %106, %110 : vector<72x128xi1>, vector<72x128xf32>
    %112 = arith.truncf %111 : vector<72x128xf32> to vector<72x128xbf16>
    %113 = vector.shape_cast %112 : vector<72x128xbf16> to vector<3x3x8x128xbf16>
    %cst_62 = arith.constant 0.000000e+00 : f32
    %114 = vector.broadcast %cst_62 : f32 to vector<8x128xf32>
    %115 = vector.extract_strided_slice %113 {offsets = [0, 0, 0, 0], sizes = [1, 1, 8, 128], strides = [1, 1, 1, 1]} : vector<3x3x8x128xbf16> to vector<1x1x8x128xbf16>
    %116 = vector.shape_cast %115 : vector<1x1x8x128xbf16> to vector<8x128xbf16>
    %c0_63 = arith.constant 0 : index
    %c0_64 = arith.constant 0 : index
    %c0_65 = arith.constant 0 : index
    %117 = vector.load %arg8[%c0_63, %c0_64, %c0_65] : memref<9x128x128xbf16, #tpu.memory_space<vmem>>, vector<1x128x128xbf16>
    %118 = vector.shape_cast %117 : vector<1x128x128xbf16> to vector<128x128xbf16>
    %cst_66 = arith.constant dense<0.000000e+00> : vector<8x128xf32>
    %119 = tpu.matmul %116, %118, %cst_66 {dimension_numbers = #tpu.dot_dimension_numbers<[1], [0], [0], [1], [0, 0, 1, 1], [], []>} : vector<8x128xbf16>, vector<128x128xbf16>, vector<8x128xf32> -> vector<8x128xf32>
    %120 = arith.addf %114, %119 : vector<8x128xf32>
    %121 = vector.extract_strided_slice %113 {offsets = [0, 1, 0, 0], sizes = [1, 1, 8, 128], strides = [1, 1, 1, 1]} : vector<3x3x8x128xbf16> to vector<1x1x8x128xbf16>
    %122 = vector.shape_cast %121 : vector<1x1x8x128xbf16> to vector<8x128xbf16>
    %c1_67 = arith.constant 1 : index
    %c0_68 = arith.constant 0 : index
    %c0_69 = arith.constant 0 : index
    %123 = vector.load %arg8[%c1_67, %c0_68, %c0_69] : memref<9x128x128xbf16, #tpu.memory_space<vmem>>, vector<1x128x128xbf16>
    %124 = vector.shape_cast %123 : vector<1x128x128xbf16> to vector<128x128xbf16>
    %cst_70 = arith.constant dense<0.000000e+00> : vector<8x128xf32>
    %125 = tpu.matmul %122, %124, %cst_70 {dimension_numbers = #tpu.dot_dimension_numbers<[1], [0], [0], [1], [0, 0, 1, 1], [], []>} : vector<8x128xbf16>, vector<128x128xbf16>, vector<8x128xf32> -> vector<8x128xf32>
    %126 = arith.addf %120, %125 : vector<8x128xf32>
    %127 = vector.extract_strided_slice %113 {offsets = [0, 2, 0, 0], sizes = [1, 1, 8, 128], strides = [1, 1, 1, 1]} : vector<3x3x8x128xbf16> to vector<1x1x8x128xbf16>
    %128 = vector.shape_cast %127 : vector<1x1x8x128xbf16> to vector<8x128xbf16>
    %c2_71 = arith.constant 2 : index
    %c0_72 = arith.constant 0 : index
    %c0_73 = arith.constant 0 : index
    %129 = vector.load %arg8[%c2_71, %c0_72, %c0_73] : memref<9x128x128xbf16, #tpu.memory_space<vmem>>, vector<1x128x128xbf16>
    %130 = vector.shape_cast %129 : vector<1x128x128xbf16> to vector<128x128xbf16>
    %cst_74 = arith.constant dense<0.000000e+00> : vector<8x128xf32>
    %131 = tpu.matmul %128, %130, %cst_74 {dimension_numbers = #tpu.dot_dimension_numbers<[1], [0], [0], [1], [0, 0, 1, 1], [], []>} : vector<8x128xbf16>, vector<128x128xbf16>, vector<8x128xf32> -> vector<8x128xf32>
    %132 = arith.addf %126, %131 : vector<8x128xf32>
    %133 = vector.extract_strided_slice %113 {offsets = [1, 0, 0, 0], sizes = [1, 1, 8, 128], strides = [1, 1, 1, 1]} : vector<3x3x8x128xbf16> to vector<1x1x8x128xbf16>
    %134 = vector.shape_cast %133 : vector<1x1x8x128xbf16> to vector<8x128xbf16>
    %c3_75 = arith.constant 3 : index
    %c0_76 = arith.constant 0 : index
    %c0_77 = arith.constant 0 : index
    %135 = vector.load %arg8[%c3_75, %c0_76, %c0_77] : memref<9x128x128xbf16, #tpu.memory_space<vmem>>, vector<1x128x128xbf16>
    %136 = vector.shape_cast %135 : vector<1x128x128xbf16> to vector<128x128xbf16>
    %cst_78 = arith.constant dense<0.000000e+00> : vector<8x128xf32>
    %137 = tpu.matmul %134, %136, %cst_78 {dimension_numbers = #tpu.dot_dimension_numbers<[1], [0], [0], [1], [0, 0, 1, 1], [], []>} : vector<8x128xbf16>, vector<128x128xbf16>, vector<8x128xf32> -> vector<8x128xf32>
    %138 = arith.addf %132, %137 : vector<8x128xf32>
    %139 = vector.extract_strided_slice %113 {offsets = [1, 1, 0, 0], sizes = [1, 1, 8, 128], strides = [1, 1, 1, 1]} : vector<3x3x8x128xbf16> to vector<1x1x8x128xbf16>
    %140 = vector.shape_cast %139 : vector<1x1x8x128xbf16> to vector<8x128xbf16>
    %c4_79 = arith.constant 4 : index
    %c0_80 = arith.constant 0 : index
    %c0_81 = arith.constant 0 : index
    %141 = vector.load %arg8[%c4_79, %c0_80, %c0_81] : memref<9x128x128xbf16, #tpu.memory_space<vmem>>, vector<1x128x128xbf16>
    %142 = vector.shape_cast %141 : vector<1x128x128xbf16> to vector<128x128xbf16>
    %cst_82 = arith.constant dense<0.000000e+00> : vector<8x128xf32>
    %143 = tpu.matmul %140, %142, %cst_82 {dimension_numbers = #tpu.dot_dimension_numbers<[1], [0], [0], [1], [0, 0, 1, 1], [], []>} : vector<8x128xbf16>, vector<128x128xbf16>, vector<8x128xf32> -> vector<8x128xf32>
    %144 = arith.addf %138, %143 : vector<8x128xf32>
    %145 = vector.extract_strided_slice %113 {offsets = [1, 2, 0, 0], sizes = [1, 1, 8, 128], strides = [1, 1, 1, 1]} : vector<3x3x8x128xbf16> to vector<1x1x8x128xbf16>
    %146 = vector.shape_cast %145 : vector<1x1x8x128xbf16> to vector<8x128xbf16>
    %c5_83 = arith.constant 5 : index
    %c0_84 = arith.constant 0 : index
    %c0_85 = arith.constant 0 : index
    %147 = vector.load %arg8[%c5_83, %c0_84, %c0_85] : memref<9x128x128xbf16, #tpu.memory_space<vmem>>, vector<1x128x128xbf16>
    %148 = vector.shape_cast %147 : vector<1x128x128xbf16> to vector<128x128xbf16>
    %cst_86 = arith.constant dense<0.000000e+00> : vector<8x128xf32>
    %149 = tpu.matmul %146, %148, %cst_86 {dimension_numbers = #tpu.dot_dimension_numbers<[1], [0], [0], [1], [0, 0, 1, 1], [], []>} : vector<8x128xbf16>, vector<128x128xbf16>, vector<8x128xf32> -> vector<8x128xf32>
    %150 = arith.addf %144, %149 : vector<8x128xf32>
    %151 = vector.extract_strided_slice %113 {offsets = [2, 0, 0, 0], sizes = [1, 1, 8, 128], strides = [1, 1, 1, 1]} : vector<3x3x8x128xbf16> to vector<1x1x8x128xbf16>
    %152 = vector.shape_cast %151 : vector<1x1x8x128xbf16> to vector<8x128xbf16>
    %c6_87 = arith.constant 6 : index
    %c0_88 = arith.constant 0 : index
    %c0_89 = arith.constant 0 : index
    %153 = vector.load %arg8[%c6_87, %c0_88, %c0_89] : memref<9x128x128xbf16, #tpu.memory_space<vmem>>, vector<1x128x128xbf16>
    %154 = vector.shape_cast %153 : vector<1x128x128xbf16> to vector<128x128xbf16>
    %cst_90 = arith.constant dense<0.000000e+00> : vector<8x128xf32>
    %155 = tpu.matmul %152, %154, %cst_90 {dimension_numbers = #tpu.dot_dimension_numbers<[1], [0], [0], [1], [0, 0, 1, 1], [], []>} : vector<8x128xbf16>, vector<128x128xbf16>, vector<8x128xf32> -> vector<8x128xf32>
    %156 = arith.addf %150, %155 : vector<8x128xf32>
    %157 = vector.extract_strided_slice %113 {offsets = [2, 1, 0, 0], sizes = [1, 1, 8, 128], strides = [1, 1, 1, 1]} : vector<3x3x8x128xbf16> to vector<1x1x8x128xbf16>
    %158 = vector.shape_cast %157 : vector<1x1x8x128xbf16> to vector<8x128xbf16>
    %c7_91 = arith.constant 7 : index
    %c0_92 = arith.constant 0 : index
    %c0_93 = arith.constant 0 : index
    %159 = vector.load %arg8[%c7_91, %c0_92, %c0_93] : memref<9x128x128xbf16, #tpu.memory_space<vmem>>, vector<1x128x128xbf16>
    %160 = vector.shape_cast %159 : vector<1x128x128xbf16> to vector<128x128xbf16>
    %cst_94 = arith.constant dense<0.000000e+00> : vector<8x128xf32>
    %161 = tpu.matmul %158, %160, %cst_94 {dimension_numbers = #tpu.dot_dimension_numbers<[1], [0], [0], [1], [0, 0, 1, 1], [], []>} : vector<8x128xbf16>, vector<128x128xbf16>, vector<8x128xf32> -> vector<8x128xf32>
    %162 = arith.addf %156, %161 : vector<8x128xf32>
    %163 = vector.extract_strided_slice %113 {offsets = [2, 2, 0, 0], sizes = [1, 1, 8, 128], strides = [1, 1, 1, 1]} : vector<3x3x8x128xbf16> to vector<1x1x8x128xbf16>
    %164 = vector.shape_cast %163 : vector<1x1x8x128xbf16> to vector<8x128xbf16>
    %c8_95 = arith.constant 8 : index
    %c0_96 = arith.constant 0 : index
    %c0_97 = arith.constant 0 : index
    %165 = vector.load %arg8[%c8_95, %c0_96, %c0_97] : memref<9x128x128xbf16, #tpu.memory_space<vmem>>, vector<1x128x128xbf16>
    %166 = vector.shape_cast %165 : vector<1x128x128xbf16> to vector<128x128xbf16>
    %cst_98 = arith.constant dense<0.000000e+00> : vector<8x128xf32>
    %167 = tpu.matmul %164, %166, %cst_98 {dimension_numbers = #tpu.dot_dimension_numbers<[1], [0], [0], [1], [0, 0, 1, 1], [], []>} : vector<8x128xbf16>, vector<128x128xbf16>, vector<8x128xf32> -> vector<8x128xf32>
    %168 = arith.addf %162, %167 : vector<8x128xf32>
    %c0_99 = arith.constant 0 : index
    %c0_100 = arith.constant 0 : index
    %169 = vector.load %arg9[%c0_99, %c0_100] : memref<1x128xf32, #tpu.memory_space<vmem>>, vector<1x128xf32>
    %170 = vector.broadcast %169 : vector<1x128xf32> to vector<8x128xf32>
    %171 = arith.addf %168, %170 : vector<8x128xf32>
    %cst_101 = arith.constant 0.000000e+00 : f32
    %172 = vector.broadcast %cst_101 : f32 to vector<8x128xf32>
    %173 = arith.cmpf oge, %171, %172 : vector<8x128xf32>
    %cst_102 = arith.constant 0.00999999977 : f32
    %174 = vector.broadcast %cst_102 : f32 to vector<8x128xf32>
    %175 = arith.mulf %174, %171 : vector<8x128xf32>
    %176 = arith.select %173, %171, %175 : vector<8x128xi1>, vector<8x128xf32>
    %177 = arith.truncf %176 : vector<8x128xf32> to vector<8x128xbf16>
    %c0_103 = arith.constant 0 : index
    %c0_104 = arith.constant 0 : index
    %178 = vector.load %arg10[%c0_103, %c0_104] : memref<1x128xbf16, #tpu.memory_space<vmem>>, vector<1x128xbf16>
    %cst_105 = arith.constant dense<0.000000e+00> : vector<1x8xf32>
    %179 = tpu.matmul %178, %177, %cst_105 {dimension_numbers = #tpu.dot_dimension_numbers<[1], [1], [0], [0], [0, 0, 1, 0], [], []>} : vector<1x128xbf16>, vector<8x128xbf16>, vector<1x8xf32> -> vector<1x8xf32>
    %c0_106 = arith.constant 0 : index
    %c0_107 = arith.constant 0 : index
    %180 = vector.load %arg11[%c0_106, %c0_107] : memref<1x1xf32, #tpu.memory_space<vmem>>, vector<1x1xf32>
    %181 = vector.broadcast %180 : vector<1x1xf32> to vector<1x8xf32>
    %182 = arith.addf %179, %181 : vector<1x8xf32>
    %183 = math.tanh %182 : vector<1x8xf32>
    %c0_108 = arith.constant 0 : index
    %c0_109 = arith.constant 0 : index
    %184 = vector.load %arg12[%c0_108, %c0_109] : memref<1x8xf32, #tpu.memory_space<vmem>>, vector<1x8xf32>
    tpu.vector_store %arg12[%c0_108, %c0_109], %183 {strides = array<i32>} : memref<1x8xf32, #tpu.memory_space<vmem>>, vector<1x8xf32>,
    return
  }
  func.func @transform_0(%arg0: i32) -> (i32, i32, i32) {
    %c0_i32 = arith.constant 0 : i32
    %c0_i32_0 = arith.constant 0 : i32
    %c0_i32_1 = arith.constant 0 : i32
    return %c0_i32, %arg0, %c0_i32_0 : i32, i32, i32
  }
  func.func @transform_1(%arg0: i32) -> (i32, i32) {
    %c0_i32 = arith.constant 0 : i32
    %c0_i32_0 = arith.constant 0 : i32
    %c0_i32_1 = arith.constant 0 : i32
    return %c0_i32, %c0_i32_0 : i32, i32
  }
  func.func @transform_2(%arg0: i32) -> (i32, i32) {
    %c0_i32 = arith.constant 0 : i32
    %c0_i32_0 = arith.constant 0 : i32
    %c0_i32_1 = arith.constant 0 : i32
    return %c0_i32, %c0_i32_0 : i32, i32
  }
  func.func @transform_3(%arg0: i32) -> (i32, i32, i32) {
    %c0_i32 = arith.constant 0 : i32
    %c0_i32_0 = arith.constant 0 : i32
    %c0_i32_1 = arith.constant 0 : i32
    %c0_i32_2 = arith.constant 0 : i32
    return %c0_i32, %c0_i32_0, %c0_i32_1 : i32, i32, i32
  }
  func.func @transform_4(%arg0: i32) -> (i32, i32) {
    %c0_i32 = arith.constant 0 : i32
    %c0_i32_0 = arith.constant 0 : i32
    %c0_i32_1 = arith.constant 0 : i32
    return %c0_i32, %c0_i32_0 : i32, i32
  }
  func.func @transform_5(%arg0: i32) -> (i32, i32, i32) {
    %c0_i32 = arith.constant 0 : i32
    %c0_i32_0 = arith.constant 0 : i32
    %c0_i32_1 = arith.constant 0 : i32
    %c0_i32_2 = arith.constant 0 : i32
    return %c0_i32, %c0_i32_0, %c0_i32_1 : i32, i32, i32
  }
  func.func @transform_6(%arg0: i32) -> (i32, i32) {
    %c0_i32 = arith.constant 0 : i32
    %c0_i32_0 = arith.constant 0 : i32
    %c0_i32_1 = arith.constant 0 : i32
    return %c0_i32, %c0_i32_0 : i32, i32
  }
  func.func @transform_7(%arg0: i32) -> (i32, i32, i32) {
    %c0_i32 = arith.constant 0 : i32
    %c0_i32_0 = arith.constant 0 : i32
    %c0_i32_1 = arith.constant 0 : i32
    %c0_i32_2 = arith.constant 0 : i32
    return %c0_i32, %c0_i32_0, %c0_i32_1 : i32, i32, i32
  }
  func.func @transform_8(%arg0: i32) -> (i32, i32) {
    %c0_i32 = arith.constant 0 : i32
    %c0_i32_0 = arith.constant 0 : i32
    %c0_i32_1 = arith.constant 0 : i32
    return %c0_i32, %c0_i32_0 : i32, i32
  }
  func.func @transform_9(%arg0: i32) -> (i32, i32) {
    %c0_i32 = arith.constant 0 : i32
    %c0_i32_0 = arith.constant 0 : i32
    %c0_i32_1 = arith.constant 0 : i32
    return %c0_i32, %c0_i32_0 : i32, i32
  }
  func.func @transform_10(%arg0: i32) -> (i32, i32) {
    %c0_i32 = arith.constant 0 : i32
    %c0_i32_0 = arith.constant 0 : i32
    %c0_i32_1 = arith.constant 0 : i32
    return %c0_i32, %c0_i32_0 : i32, i32
  }
  func.func @transform_11(%arg0: i32) -> (i32, i32) {
    %c0_i32 = arith.constant 0 : i32
    %c0_i32_0 = arith.constant 0 : i32
    return %c0_i32, %arg0 : i32, i32
  }
}

</mosaic_0001>

<bundles_post_ra>
// kernel: forward.1
= control target key start
LH: loop header
LB: loop body
LE: loop exit
PB: predicated region body
PF: predicated region fallthrough
CT: control target
= control target key end

     0   :  { %vm244_vm0 = vcmask 1044480   ;;  %vm245_vm1 = vcmask 1045504   ;;  %vm189_vm2 = vcmask 220160   ;;  %v5315_v1 = vmov 65535   ;;  %s6427_s1 = inlined_call_operand.vmem [shape: bf16[27,64], index: 1, kind: input, shape index: {}]   ;;  %s6428_s0 = inlined_call_operand.vmem [shape: bf16[36,8,27], index: 0, kind: input, shape index: {}]   ;;  %s6429_s3 = inlined_call_operand.vmem [shape: bf16[9,64,64], index: 3, kind: input, shape index: {}]   ;;  %s6430_s2 = inlined_call_operand.vmem [shape: f32[1,64], index: 2, kind: input, shape index: {}]   ;;  %s6431_s5 = inlined_call_operand.vmem [shape: bf16[4,64,128], index: 5, kind: input, shape index: {}]   ;;  %s6432_s4 = inlined_call_operand.vmem [shape: f32[1,64], index: 4, kind: input, shape index: {}]   ;;  %s6433_s7 = inlined_call_operand.vmem [shape: bf16[9,128,128], index: 7, kind: input, shape index: {}]   ;;  %s6434_s6 = inlined_call_operand.vmem [shape: f32[1,128], index: 6, kind: input, shape index: {}]   ;;  %s6435_s10 = inlined_call_operand.<no memory space> [shape: f32[1,1], index: 10, kind: input, shape index: {}]   ;;  %s6436_s8 = inlined_call_operand.vmem [shape: f32[1,128], index: 8, kind: input, shape index: {}]   ;;  %s6437_s9 = inlined_call_operand.vmem [shape: bf16[1,128], index: 9, kind: input, shape index: {}]   ;;  %s6438_s11 = inlined_call_operand.vmem [shape: f32[1,8], index: 11, kind: output, shape index: {}]  }
   0x1   :  { %v5169_v0 = vld [vmem:[%s6427_s1] sm:$0xff]   ;;  %v246_v2 = vsel %vm244_vm0, 4294967295, %v5315_v1  ;;  %v5170_v3 = vld [vmem:[%s6427_s1 + $0x8] sm:$0x3f]   ;;  %v5173_v8 = vld [vmem:[%s6428_s0 + $0x10] sm:$0xff]   ;;  %vm657_vm8 = vcmask 523264  }
   0x2   :  { %4478 = vmatprep.subr.bf16.mxu0 %v5169_v0  ;;  %v247_v4 = vsel %vm245_vm1, %v246_v2, 0  ;;  %v5171_v5 = vld [vmem:[%s6428_s0] sm:$0xff]   ;;  %5032 = vmatprep.subr.bf16.mxu1 %v5169_v0  ;;  %v5172_v7 = vld [vmem:[%s6428_s0 + $0x8] sm:$0xff]   ;;  %v5174_v9 = vld [vmem:[%s6428_s0 + $0x18] sm:$0xff]  }
   0x3   :  { %4479 = vmatpush3.bf16.msra.mxu0 %v5169_v0  ;;  %v249_v6 = vand.u32 %v5170_v3, %v247_v4  ;;  %5034 = vmatpush3.bf16.msra.mxu1 %v5169_v0  ;;  %v5175_v10 = vld [vmem:[%s6428_s0 + $0x20] sm:$0xff]   ;;  %v5184_v11 = vld [vmem:[%s6428_s0 + $0x70] sm:$0xff]   ;;  %v5186_v12 = vld [vmem:[%s6428_s0 + $0x78] sm:$0xff]  }
   0x4   :  { %4482 = vmatprep.mubr.msk.bf16.mxu0 %vm189_vm2, %v5171_v5  ;;  %4510 = vmatprep.mubr.msk.bf16.mxu1 %vm189_vm2, %v5184_v11  ;;  %v5187_v13 = vld [vmem:[%s6428_s0 + $0x80] sm:$0xff]   ;;  %v5176_v14 = vld [vmem:[%s6428_s0 + $0x28] sm:$0xff]   ;;  %v5177_v15 = vld [vmem:[%s6428_s0 + $0x30] sm:$0xff]  }
   0x5   :  { %4480 = vmatprep.subr.bf16.mxu0 %v249_v6  ;;  %5033 = vmatprep.subr.bf16.mxu1 %v249_v6  ;;  %v5188_v16 = vld [vmem:[%s6428_s0 + $0x88] sm:$0xff]   ;;  %v5178_v17 = vld [vmem:[%s6428_s0 + $0x38] sm:$0xff]   ;;  %v5179_v18 = vld [vmem:[%s6428_s0 + $0x40] sm:$0xff]  }
   0x6   :  { %v5180_v19 = vld [vmem:[%s6428_s0 + $0x48] sm:$0xff]   ;;  %v5181_v20 = vld [vmem:[%s6428_s0 + $0x50] sm:$0xff]   ;;  %v5182_v21 = vld [vmem:[%s6428_s0 + $0x58] sm:$0xff]  }
   0x7   :  { %4481 = vmatpush3.bf16.msra.mxu0 %v249_v6  ;;  %5035 = vmatpush3.bf16.msra.mxu1 %v249_v6  ;;  %v5183_v22 = vld [vmem:[%s6428_s0 + $0x60] sm:$0xff]   ;;  %v5185_v23 = vld [vmem:[%s6428_s0 + $0x68] sm:$0xff]   ;;  %v5191_v26 = vld [vmem:[%s6429_s3 + $0x30] sm:$0xff]  }
   0x8   :  { %v5189_v24 = vld [vmem:[%s6429_s3 + $0x20] sm:$0xff]   ;;  %v5190_v25 = vld [vmem:[%s6429_s3 + $0x28] sm:$0xff]   ;;  %v5192_v27 = vld [vmem:[%s6429_s3 + $0x38] sm:$0xff]  }
   0x9   :  { %4518 = vmatprep.subr.bf16.mxu1 %v5189_v24  ;;  %v5472_v28 = vld [vmem:[%s6429_s3] sm:$0xff]  }
   0xa   :  { %4483 = vmatmul.mubr.msk.bf16.vlgmr.msra.gmra.mrb[0].mxu0 %vm189_vm2, %v5172_v7  ;;  %4511 = vmatmul.mubr.msk.bf16.vlgmr.msra.gmra.mrb[0].mxu1 %vm189_vm2, %v5186_v12  ;;  %v5478_v29 = vld [vmem:[%s6430_s2] ss:$0 sm:$0xff] }
   0xb   :  { %4486 = vmatprep.mubr.msk.bf16.mxu0 %vm189_vm2, %v5173_v8  ;;  %4514 = vmatprep.mubr.msk.bf16.mxu1 %vm189_vm2, %v5187_v13 }
   0xc   :  { %4519 = vmatpush3.bf16.msra.mxu1 %v5189_v24 }
   0xd   :  { %4520 = vmatprep.subr.bf16.mxu1 %v5190_v25 }
  0x10   :  { %4521 = vmatpush3.bf16.msra.mxu1 %v5190_v25 }
  0x11   :  { %4522 = vmatprep.subr.bf16.mxu1 %v5191_v26 }
  0x12   :  { %4487 = vmatmul.mubr.msk.bf16.gmra.mrb[4].mxu0 %vm189_vm2, %v5174_v9  ;;  %4515 = vmatmul.mubr.msk.bf16.gmra.mrb[4].mxu1 %vm189_vm2, %v5188_v16 }
  0x13   :  { %4490 = vmatprep.mubr.msk.bf16.mxu0 %vm189_vm2, %v5175_v10 }
  0x14   :  { %4523 = vmatpush3.bf16.msra.mxu1 %v5191_v26 }
  0x15   :  { %4524 = vmatprep.subr.bf16.mxu1 %v5192_v27 }
  0x18   :  { %4525 = vmatpush3.bf16.msra.mxu1 %v5192_v27 }
  0x19   :  { %4542 = vmatprep.subr.bf16.mxu1 %v5472_v28 }
  0x1a   :  { %4491 = vmatmul.mubr.msk.bf16.gmra.mrb[8].mxu0 %vm189_vm2, %v5176_v14 }
  0x1b   :  { %4494 = vmatprep.mubr.msk.bf16.mxu0 %vm189_vm2, %v5177_v15 }
  0x22   :  { %4495 = vmatmul.mubr.msk.bf16.gmra.mrb[12].mxu0 %vm189_vm2, %v5178_v17 }
  0x23   :  { %4498 = vmatprep.mubr.msk.bf16.mxu0 %vm189_vm2, %v5179_v18 }
  0x2a   :  { %4499 = vmatmul.mubr.msk.bf16.gmra.mrb[16].mxu0 %vm189_vm2, %v5180_v19 }
  0x2b   :  { %4502 = vmatprep.mubr.msk.bf16.mxu0 %vm189_vm2, %v5181_v20 }
  0x32   :  { %4503 = vmatmul.mubr.msk.bf16.gmra.mrb[20].mxu0 %vm189_vm2, %v5182_v21 }
  0x33   :  { %4506 = vmatprep.mubr.msk.bf16.mxu0 %vm189_vm2, %v5183_v22 }
  0x3a   :  { %4507 = vmatmul.mubr.msk.bf16.gmra.mrb[24].mxu0 %vm189_vm2, %v5185_v23 }
  0xdd   :  { %v4484_v30 = vpop.f32.mrb[0].mxu0  ;;  %v4512_v51 = vpop.f32.mrb[0].mxu1 }
  0xde   :  { %v294_v31 = vadd.f32 %v4484_v30, %v5478_v29  ;;  %v285_v32 = vpop.f32.mrb[1].mxu0  ;;  %v406_v55 = vadd.f32 %v4512_v51, %v5478_v29  ;;  %v397_v56 = vpop.f32.mrb[1].mxu1 }
  0xdf   :  { %v286_v33 = vadd.f32 %v5478_v29, %v285_v32  ;;  %v4485_v34 = vpop.f32.mrb[2].mxu0  ;;  %v4513_v61 = vpop.f32.mrb[2].mxu1  ;;  %v398_v7 = vadd.f32 %v5478_v29, %v397_v56 }
  0xe0   :  { %v466_v35 = vmul.f32 0.01, %v294_v31  ;;  %v297_v36 = vadd.f32 %v4485_v34, %v5478_v29  ;;  %v288_v37 = vpop.f32.mrb[3].mxu0  ;;  %vm430_vm3 = vcmp.ge.f32.partialorder %v294_v31, 0.0  ;;  %v400_v0 = vpop.f32.mrb[3].mxu1  ;;  %v409_v8 = vadd.f32 %v4513_v61, %v5478_v29 }
  0xe1   :  { %v464_v38 = vmul.f32 0.01, %v286_v33  ;;  %v289_v39 = vadd.f32 %v5478_v29, %v288_v37  ;;  %vm428_vm4 = vcmp.ge.f32.partialorder %v286_v33, 0.0  ;;  %v401_v9 = vadd.f32 %v5478_v29, %v400_v0 }
  0xe2   :  { %vm431_vm5 = vcmp.ge.f32.partialorder %v297_v36, 0.0  ;;  %v467_v40 = vmul.f32 0.01, %v297_v36  ;;  %v502_v42 = vsel %vm430_vm3, %v294_v31, %v466_v35  ;;  %v494_v14 = vmul.f32 0.01, %v406_v55 }
  0xe3   :  { %vm429_vm6 = vcmp.ge.f32.partialorder %v289_v39, 0.0  ;;  %v465_v41 = vmul.f32 0.01, %v289_v39  ;;  %v500_v44 = vsel %vm428_vm4, %v286_v33, %v464_v38  ;;  %vm458_vm12 = vcmp.ge.f32.partialorder %v406_v55, 0.0  ;;  %v5194_v33 = vld [vmem:[%s6429_s3 + $0x8] sm:$0xff]  }
  0xe4   :  { %v503_v43 = vsel %vm431_vm5, %v297_v36, %v467_v40  ;;  %v492_v18 = vmul.f32 0.01, %v398_v7  ;;  %vm456_vm13 = vcmp.ge.f32.partialorder %v398_v7, 0.0  ;;  %vm459_vm14 = vcmp.ge.f32.partialorder %v409_v8, 0.0 }
  0xe5   :  { %v5484_v45 = vpack.c.bf16 %v503_v43, %v502_v42  ;;  %v501_v46 = vsel %vm429_vm6, %v289_v39, %v465_v41  ;;  %v4488_v47 = vpop.f32.mrb[4].mxu0  ;;  %v495_v21 = vmul.f32 0.01, %v409_v8  ;;  %v530_v30 = vsel %vm458_vm12, %v406_v55, %v494_v14  ;;  %v4516_v14 = vpop.f32.mrb[4].mxu1 }
  0xe6   :  { %v5486_v48 = vpack.c.bf16 %v501_v46, %v500_v44  ;;  %v310_v49 = vadd.f32 %v4488_v47, %v5478_v29  ;;  %v301_v50 = vpop.f32.mrb[5].mxu0  ;;  %v528_v34 = vsel %vm456_vm13, %v398_v7, %v492_v18  ;;  %vm457_vm3 = vcmp.ge.f32.partialorder %v401_v9, 0.0 }
  0xe7   :  { %v302_v52 = vadd.f32 %v5478_v29, %v301_v50  ;;  %v4489_v53 = vpop.f32.mrb[6].mxu0  ;;  %v574_v54 = vunpack.c.l.b16 %v5484_v45  ;;  %v575_v5 = vunpack.c.h.b16 %v5484_v45  ;;  %v531_v37 = vsel %vm459_vm14, %v409_v8, %v495_v21  ;;  %v5195_v50 = vld [vmem:[%s6429_s3 + $0x10] sm:$0xff]   ;;  %v413_v21 = vpop.f32.mrb[5].mxu1 }
  0xe8   :  { %v573_v57 = vunpack.c.h.b16 %v5486_v48  ;;  %vm434_vm7 = vcmp.ge.f32.partialorder %v310_v49, 0.0  ;;  %v470_v58 = vmul.f32 0.01, %v310_v49  ;;  %v313_v59 = vadd.f32 %v4489_v53, %v5478_v29  ;;  %v304_v60 = vpop.f32.mrb[7].mxu0 }
  0xe9   :  { %v468_v62 = vmul.f32 0.01, %v302_v52  ;;  %v305_v63 = vadd.f32 %v5478_v29, %v304_v60  ;;  %vm432_vm9 = vcmp.ge.f32.partialorder %v302_v52, 0.0  ;;  %v5515_v39 = vpack.c.bf16 %v531_v37, %v530_v30 }
  0xea   :  { %vm435_vm10 = vcmp.ge.f32.partialorder %v313_v59, 0.0  ;;  %v471_v1 = vmul.f32 0.01, %v313_v59  ;;  %v625_v2 = vpack.c.b16 %v574_v54, %v573_v57  ;;  %v506_v3 = vsel %vm434_vm7, %v310_v49, %v470_v58 }
  0xeb   :  { %vm433_vm11 = vcmp.ge.f32.partialorder %v305_v63, 0.0  ;;  %v469_v4 = vmul.f32 0.01, %v305_v63  ;;  %v504_v10 = vsel %vm432_vm9, %v302_v52, %v468_v62  ;;  %v493_v40 = vmul.f32 0.01, %v401_v9 }
  0xec   :  { %v507_v6 = vsel %vm435_vm10, %v313_v59, %v471_v1  ;;  %4526 = vmatprep.mubr.msk.bf16.mxu1 %vm657_vm8, %v625_v2 }
  0xed   :  { %v5500_v11 = vpack.c.bf16 %v507_v6, %v506_v3  ;;  %v505_v12 = vsel %vm433_vm11, %v305_v63, %v469_v4  ;;  %v4492_v13 = vpop.f32.mrb[8].mxu0  ;;  %v529_v51 = vsel %vm457_vm3, %v401_v9, %v493_v40  ;;  %v5196_v3 = vld [vmem:[%s6429_s3 + $0x18] sm:$0xff]  }
  0xee   :  { %v5502_v15 = vpack.c.bf16 %v505_v12, %v504_v10  ;;  %v326_v16 = vadd.f32 %v4492_v13, %v5478_v29  ;;  %v317_v17 = vpop.f32.mrb[9].mxu0  ;;  %v5529_v55 = vpack.c.bf16 %v529_v51, %v528_v34 }
  0xef   :  { %v318_v19 = vadd.f32 %v5478_v29, %v317_v17  ;;  %v4493_v20 = vpop.f32.mrb[10].mxu0  ;;  %v579_v58 = vunpack.c.h.b16 %v5500_v11 }
  0xf0   :  { %v576_v22 = vunpack.c.l.b16 %v5502_v15  ;;  %vm438_vm15 = vcmp.ge.f32.partialorder %v326_v16, 0.0  ;;  %v474_v23 = vmul.f32 0.01, %v326_v16  ;;  %v329_v24 = vadd.f32 %v4493_v20, %v5478_v29  ;;  %v320_v25 = vpop.f32.mrb[11].mxu0 }
  0xf1   :  { %vm436_vm0 = vcmp.ge.f32.partialorder %v318_v19, 0.0  ;;  %v472_v26 = vmul.f32 0.01, %v318_v19  ;;  %v321_v27 = vadd.f32 %v5478_v29, %v320_v25  ;;  %v422_v20 = vadd.f32 %v4516_v14, %v5478_v29 }
  0xf2   :  { %v626_v31 = vpack.c.b16 %v576_v22, %v575_v5  ;;  %vm439_vm1 = vcmp.ge.f32.partialorder %v329_v24, 0.0  ;;  %v475_v32 = vmul.f32 0.01, %v329_v24  ;;  %v510_v35 = vsel %vm438_vm15, %v326_v16, %v474_v23 }
  0xf3   :  { %vm437_vm2 = vcmp.ge.f32.partialorder %v321_v27, 0.0  ;;  %v473_v36 = vmul.f32 0.01, %v321_v27  ;;  %v508_v41 = vsel %vm436_vm0, %v318_v19, %v472_v26  ;;  %v5557_v19 = vld [vmem:[%s6429_s3 + $0x40] sm:$0xff]   ;;  %v4517_v26 = vpop.f32.mrb[6].mxu1  ;;  %vm462_vm13 = vcmp.ge.f32.partialorder %v422_v20, 0.0 }
  0xf4   :  { %v511_v38 = vsel %vm439_vm1, %v329_v24, %v475_v32  ;;  %4527 = vmatmul.mubr.msk.bf16.vlgmr.msra.gmra.mrb[8].mxu1 %vm657_vm8, %v626_v31  ;;  %v416_v31 = vpop.f32.mrb[7].mxu1  ;;  %v425_v40 = vadd.f32 %v4517_v26, %v5478_v29 }
  0xf5   :  { %v5518_v42 = vpack.c.bf16 %v511_v38, %v510_v35  ;;  %v509_v43 = vsel %vm437_vm2, %v321_v27, %v473_v36  ;;  %v4496_v44 = vpop.f32.mrb[12].mxu0  ;;  %4543 = vmatpush3.bf16.msra.mxu1 %v5472_v28  ;;  %v414_v38 = vadd.f32 %v5478_v29, %v413_v21 }
  0xf6   :  { %v5521_v46 = vpack.c.bf16 %v509_v43, %v508_v41  ;;  %v342_v47 = vadd.f32 %v4496_v44, %v5478_v29  ;;  %v333_v49 = vpop.f32.mrb[13].mxu0  ;;  %4544 = vmatprep.subr.bf16.mxu1 %v5194_v33  ;;  %v417_v41 = vadd.f32 %v5478_v29, %v416_v31  ;;  %vm463_vm15 = vcmp.ge.f32.partialorder %v425_v40, 0.0 }
  0xf7   :  { %v334_v52 = vadd.f32 %v5478_v29, %v333_v49  ;;  %v4497_v53 = vpop.f32.mrb[14].mxu0  ;;  %v582_v54 = vunpack.c.l.b16 %v5518_v42  ;;  %vm460_vm14 = vcmp.ge.f32.partialorder %v414_v38, 0.0 }
  0xf8   :  { %v478_v56 = vmul.f32 0.01, %v342_v47  ;;  %v345_v28 = vadd.f32 %v4497_v53, %v5478_v29  ;;  %v336_v57 = vpop.f32.mrb[15].mxu0  ;;  %v580_v59 = vunpack.c.l.b16 %v5521_v46  ;;  %vm442_vm4 = vcmp.ge.f32.partialorder %v342_v47, 0.0 }
  0xf9   :  { %v476_v60 = vmul.f32 0.01, %v334_v52  ;;  %v337_v61 = vadd.f32 %v5478_v29, %v336_v57  ;;  %v581_v62 = vunpack.c.h.b16 %v5521_v46  ;;  %4545 = vmatpush3.bf16.msra.mxu1 %v5194_v33  ;;  %vm440_vm5 = vcmp.ge.f32.partialorder %v334_v52, 0.0 }
  0xfa   :  { %vm443_vm6 = vcmp.ge.f32.partialorder %v345_v28, 0.0  ;;  %v479_v63 = vmul.f32 0.01, %v345_v28  ;;  %v5536_v0 = vpack.c.b16 %v580_v59, %v579_v58  ;;  %4546 = vmatprep.subr.bf16.mxu1 %v5195_v50  ;;  %v514_v4 = vsel %vm442_vm4, %v342_v47, %v478_v56 }
  0xfb   :  { %vm441_vm7 = vcmp.ge.f32.partialorder %v337_v61, 0.0  ;;  %v477_v1 = vmul.f32 0.01, %v337_v61  ;;  %v5538_v2 = vpack.c.b16 %v582_v54, %v581_v62  ;;  %v512_v6 = vsel %vm440_vm5, %v334_v52, %v476_v60 }
  0xfc   :  { %v515_v5 = vsel %vm443_vm6, %v345_v28, %v479_v63  ;;  %4530 = vmatprep.mubr.msk.bf16.mxu1 %vm657_vm8, %v5536_v0  ;;  %v496_v54 = vmul.f32 0.01, %v414_v38  ;;  %v499_v57 = vmul.f32 0.01, %v425_v40  ;;  %vm461_vm4 = vcmp.ge.f32.partialorder %v417_v41, 0.0 }
  0xfd   :  { %v5545_v7 = vpack.c.bf16 %v515_v5, %v514_v4  ;;  %v513_v8 = vsel %vm441_vm7, %v337_v61, %v477_v1  ;;  %v4500_v9 = vpop.f32.mrb[16].mxu0  ;;  %4531 = vmatmul.mubr.msk.bf16.gmra.mrb[12].mxu1 %vm657_vm8, %v5538_v2  ;;  %v497_v14 = vmul.f32 0.01, %v417_v41 }
  0xfe   :  { %v5549_v10 = vpack.c.bf16 %v513_v8, %v512_v6  ;;  %v358_v12 = vadd.f32 %v4500_v9, %v5478_v29  ;;  %v349_v13 = vpop.f32.mrb[17].mxu0  ;;  %4547 = vmatpush3.bf16.msra.mxu1 %v5195_v50  ;;  %v498_v50 = vmul.f32 0.01, %v422_v20  ;;  %v532_v5 = vsel %vm460_vm14, %v414_v38, %v496_v54 }
  0xff   :  { %v350_v16 = vadd.f32 %v5478_v29, %v349_v13  ;;  %v4501_v17 = vpop.f32.mrb[18].mxu0  ;;  %v586_v18 = vunpack.c.l.b16 %v5545_v7  ;;  %4548 = vmatprep.subr.bf16.mxu1 %v5196_v3  ;;  %v587_v36 = vunpack.c.h.b16 %v5545_v7  ;;  %v535_v9 = vsel %vm463_vm15, %v425_v40, %v499_v57 }
 0x100   :  { %vm446_vm9 = vcmp.ge.f32.partialorder %v358_v12, 0.0  ;;  %v482_v22 = vmul.f32 0.01, %v358_v12  ;;  %v361_v23 = vadd.f32 %v4501_v17, %v5478_v29  ;;  %v352_v24 = vpop.f32.mrb[19].mxu0  ;;  %v585_v25 = vunpack.c.h.b16 %v5549_v10 }
 0x101   :  { %v480_v27 = vmul.f32 0.01, %v350_v16  ;;  %v353_v30 = vadd.f32 %v5478_v29, %v352_v24  ;;  %vm444_vm10 = vcmp.ge.f32.partialorder %v350_v16, 0.0  ;;  %v534_v1 = vsel %vm462_vm13, %v422_v20, %v498_v50 }
 0x102   :  { %vm447_vm11 = vcmp.ge.f32.partialorder %v361_v23, 0.0  ;;  %v483_v32 = vmul.f32 0.01, %v361_v23  ;;  %v5563_v33 = vpack.c.b16 %v586_v18, %v585_v25  ;;  %4549 = vmatpush3.bf16.msra.mxu1 %v5196_v3  ;;  %v518_v34 = vsel %vm446_vm9, %v358_v12, %v482_v22 }
 0x103   :  { %vm445_vm12 = vcmp.ge.f32.partialorder %v353_v30, 0.0  ;;  %v481_v35 = vmul.f32 0.01, %v353_v30  ;;  %4566 = vmatprep.subr.bf16.mxu1 %v5557_v19  ;;  %v516_v43 = vsel %vm444_vm10, %v350_v16, %v480_v27  ;;  %v5586_v13 = vpack.c.bf16 %v535_v9, %v534_v1  ;;  %v5210_v9 = vld [vmem:[%s6429_s3 + $0xa8] sm:$0xff]  }
 0x104   :  { %v519_v37 = vsel %vm447_vm11, %v361_v23, %v483_v32  ;;  %4534 = vmatprep.mubr.msk.bf16.mxu1 %vm657_vm8, %v5563_v33  ;;  %v603_v24 = vunpack.c.h.b16 %v5515_v39  ;;  %v533_v25 = vsel %vm461_vm4, %v417_v41, %v497_v14  ;;  %vm5317_vm10 = vmmov 0  }
 0x105   :  { %v5572_v44 = vpack.c.bf16 %v519_v37, %v518_v34  ;;  %v517_v47 = vsel %vm445_vm12, %v353_v30, %v481_v35  ;;  %v4504_v49 = vpop.f32.mrb[20].mxu0  ;;  %v5598_v32 = vpack.c.bf16 %v533_v25, %v532_v5  ;;  %v5206_v5 = vld [vmem:[%s6429_s3 + $0x88] sm:$0xff]   ;;  %v5225_v25 = vld [vmem:[%s6431_s5 + $0x20] sm:$0xff]  }
 0x106   :  { %v5574_v51 = vpack.c.bf16 %v517_v47, %v516_v43  ;;  %v374_v52 = vadd.f32 %v4504_v49, %v5478_v29  ;;  %v365_v53 = vpop.f32.mrb[21].mxu0 }
 0x107   :  { %v366_v56 = vadd.f32 %v5478_v29, %v365_v53  ;;  %v4505_v28 = vpop.f32.mrb[22].mxu0  ;;  %v591_v26 = vunpack.c.h.b16 %v5572_v44  ;;  %v604_v49 = vunpack.c.l.b16 %v5598_v32  ;;  %v605_v1 = vunpack.c.h.b16 %v5598_v32 }
 0x108   :  { %vm450_vm0 = vcmp.ge.f32.partialorder %v374_v52, 0.0  ;;  %v486_v58 = vmul.f32 0.01, %v374_v52  ;;  %v377_v59 = vadd.f32 %v4505_v28, %v5478_v29  ;;  %v368_v60 = vpop.f32.mrb[23].mxu0  ;;  %v588_v61 = vunpack.c.l.b16 %v5574_v51 }
 0x109   :  { %vm448_vm1 = vcmp.ge.f32.partialorder %v366_v56, 0.0  ;;  %v484_v62 = vmul.f32 0.01, %v366_v56  ;;  %v369_v63 = vadd.f32 %v5478_v29, %v368_v60  ;;  %v5200_v60 = vld [vmem:[%s6429_s3 + $0x58] sm:$0xff]  }
 0x10a   :  { %vm451_vm2 = vcmp.ge.f32.partialorder %v377_v59, 0.0  ;;  %v487_v3 = vmul.f32 0.01, %v377_v59  ;;  %v5581_v4 = vpack.c.b16 %v588_v61, %v587_v36  ;;  %v522_v6 = vsel %vm450_vm0, %v374_v52, %v486_v58  ;;  %v5202_v61 = vld [vmem:[%s6429_s3 + $0x68] sm:$0xff]  }
 0x10b   :  { %vm449_vm3 = vcmp.ge.f32.partialorder %v369_v63, 0.0  ;;  %v485_v8 = vmul.f32 0.01, %v369_v63  ;;  %v520_v16 = vsel %vm448_vm1, %v366_v56, %v484_v62  ;;  %v5611_v56 = vpack.c.b16 %v604_v49, %v603_v24  ;;  %v5203_v62 = vld [vmem:[%s6429_s3 + $0x70] sm:$0xff]  }
 0x10c   :  { %v523_v12 = vsel %vm451_vm2, %v377_v59, %v487_v3  ;;  %4535 = vmatmul.mubr.msk.bf16.gmra.mrb[16].mxu1 %vm657_vm8, %v5581_v4  ;;  %v5198_v59 = vld [vmem:[%s6429_s3 + $0x48] sm:$0xff]   ;;  %v5316_v24 = vmov 0.0  }
 0x10d   :  { %v5589_v17 = vpack.c.bf16 %v523_v12, %v522_v6  ;;  %v521_v18 = vsel %vm449_vm3, %v369_v63, %v485_v8  ;;  %v4508_v20 = vpop.f32.mrb[24].mxu0  ;;  %v606_v63 = vunpack.c.l.b16 %v5586_v13  ;;  %v5207_v6 = vld [vmem:[%s6429_s3 + $0x90] sm:$0xff]   ;;  %v5209_v8 = vld [vmem:[%s6429_s3 + $0xa0] sm:$0xff]   ;;  %4734 = vmatprep.subr.bf16.mxu0 %v5316_v24  ;;  %4742 = vmatprep.mubr.msk.bf16.mxu0 %vm5317_vm10, %v5316_v24 }
 0x10e   :  { %v5591_v21 = vpack.c.bf16 %v521_v18, %v520_v16  ;;  %v390_v22 = vadd.f32 %v4508_v20, %v5478_v29  ;;  %v381_v23 = vpop.f32.mrb[25].mxu0  ;;  %v5211_v12 = vld [vmem:[%s6429_s3 + $0xb0] sm:$0xff]   ;;  %4735 = vmatpush3.bf16.msra.mxu0 %v5225_v25 }
 0x10f   :  { %v594_v27 = vunpack.c.l.b16 %v5589_v17  ;;  %v382_v30 = vadd.f32 %v5478_v29, %v381_v23  ;;  %v4509_v31 = vpop.f32.mrb[26].mxu0  ;;  %v5676_v3 = vpack.c.b16 %v606_v63, %v605_v1  ;;  %4736 = vmatprep.subr.bf16.mxu0 %v5316_v24  ;;  %v5229_v63 = vld [vmem:[%s6431_s5] sm:$0xff]  }
 0x110   :  { %v592_v34 = vunpack.c.l.b16 %v5591_v21  ;;  %v593_v35 = vunpack.c.h.b16 %v5591_v21  ;;  %vm454_vm5 = vcmp.ge.f32.partialorder %v390_v22, 0.0  ;;  %v490_v36 = vmul.f32 0.01, %v390_v22  ;;  %v384_v37 = vpop.f32.mrb[27].mxu0 }
 0x111   :  { %vm452_vm6 = vcmp.ge.f32.partialorder %v382_v30, 0.0  ;;  %v488_v38 = vmul.f32 0.01, %v382_v30  ;;  %v393_v40 = vadd.f32 %v4509_v31, %v5478_v29  ;;  %v385_v41 = vadd.f32 %v5478_v29, %v384_v37  ;;  %v5217_v31 = vld [vmem:[%s6429_s3 + $0xe0] sm:$0xff]  }
 0x112   :  { %v5604_v43 = vpack.c.b16 %v592_v34, %v591_v26  ;;  %v5606_v47 = vpack.c.b16 %v594_v27, %v593_v35  ;;  %v526_v50 = vsel %vm454_vm5, %v390_v22, %v490_v36  ;;  %v600_v22 = vunpack.c.l.b16 %v5529_v55  ;;  %v5226_v26 = vld [vmem:[%s6431_s5 + $0x28] sm:$0xff]   ;;  %v5219_v35 = vld [vmem:[%s6429_s3 + $0xf0] sm:$0xff]  }
 0x113   :  { %vm455_vm7 = vcmp.ge.f32.partialorder %v393_v40, 0.0  ;;  %v491_v52 = vmul.f32 0.01, %v393_v40  ;;  %vm453_vm9 = vcmp.ge.f32.partialorder %v385_v41, 0.0  ;;  %v524_v53 = vsel %vm452_vm6, %v382_v30, %v488_v38  ;;  %v5214_v27 = vld [vmem:[%s6429_s3 + $0xc8] sm:$0xff]   ;;  %4737 = vmatpush3.bf16.msra.mxu0 %v5226_v26  ;;  %v5215_v30 = vld [vmem:[%s6429_s3 + $0xd0] sm:$0xff]  }
 0x114   :  { %4538 = vmatprep.mubr.msk.bf16.mxu1 %vm657_vm8, %v5604_v43  ;;  %v489_v54 = vmul.f32 0.01, %v385_v41  ;;  %4738 = vmatprep.subr.bf16.mxu0 %v5316_v24  ;;  %v5218_v34 = vld [vmem:[%s6429_s3 + $0xe8] sm:$0xff]  }
 0x115   :  { %4539 = vmatmul.mubr.msk.bf16.gmra.mrb[20].mxu1 %vm657_vm8, %v5606_v47  ;;  %v527_v29 = vsel %vm455_vm7, %v393_v40, %v491_v52  ;;  %v5222_v36 = vld [vmem:[%s6429_s3 + $0x108] sm:$0xff]  }
 0x116   :  { %4550 = vmatprep.mubr.msk.bf16.mxu1 %vm657_vm8, %v5486_v48  ;;  %v5617_v28 = vpack.c.bf16 %v527_v29, %v526_v50  ;;  %v525_v57 = vsel %vm453_vm9, %v385_v41, %v489_v54  ;;  %v5199_v48 = vld [vmem:[%s6429_s3 + $0x50] sm:$0xff]  }
 0x117   :  { %v5619_v58 = vpack.c.bf16 %v525_v57, %v524_v53 }
 0x118   :  { %v598_v16 = vunpack.c.l.b16 %v5617_v28  ;;  %v599_v20 = vunpack.c.h.b16 %v5617_v28 }
 0x119   :  { %v597_v14 = vunpack.c.h.b16 %v5619_v58 }
 0x11a   :  { %v5740_v23 = vpack.c.b16 %v600_v22, %v599_v20 }
 0x11b   :  { %v5732_v18 = vpack.c.b16 %v598_v16, %v597_v14  ;;  %v5230_v14 = vld [vmem:[%s6431_s5 + $0x8] sm:$0xff]  }
 0x11d   :  { %4551 = vmatmul.mubr.msk.bf16.vlgmr.msra.gmra.mrb[8].mxu1 %vm657_vm8, %v5484_v45 }
 0x11e   :  { %4554 = vmatprep.mubr.msk.bf16.mxu1 %vm657_vm8, %v5500_v11  ;;  %4567 = vmatpush3.bf16.msra.mxu1 %v5557_v19  ;;  %v5201_v19 = vld [vmem:[%s6429_s3 + $0x60] sm:$0xff]  }
 0x11f   :  { %4568 = vmatprep.subr.bf16.mxu1 %v5198_v59 }
 0x122   :  { %4569 = vmatpush3.bf16.msra.mxu1 %v5198_v59 }
 0x123   :  { %4570 = vmatprep.subr.bf16.mxu1 %v5199_v48 }
 0x125   :  { %4555 = vmatmul.mubr.msk.bf16.gmra.mrb[12].mxu1 %vm657_vm8, %v5521_v46 }
 0x126   :  { %4558 = vmatprep.mubr.msk.bf16.mxu1 %vm657_vm8, %v5549_v10  ;;  %4571 = vmatpush3.bf16.msra.mxu1 %v5199_v48 }
 0x127   :  { %4572 = vmatprep.subr.bf16.mxu1 %v5200_v60 }
 0x12a   :  { %4573 = vmatpush3.bf16.msra.mxu1 %v5200_v60 }
 0x12b   :  { %4590 = vmatprep.subr.bf16.mxu1 %v5201_v19 }
 0x12d   :  { %4559 = vmatmul.mubr.msk.bf16.gmra.mrb[16].mxu1 %vm657_vm8, %v5545_v7 }
 0x12e   :  { %4562 = vmatprep.mubr.msk.bf16.mxu1 %vm657_vm8, %v5572_v44 }
 0x135   :  { %4563 = vmatmul.mubr.msk.bf16.gmra.mrb[20].mxu1 %vm657_vm8, %v5591_v21 }
 0x136   :  { %4574 = vmatprep.mubr.msk.bf16.mxu1 %vm657_vm8, %v5484_v45  ;;  %v5204_v45 = vld [vmem:[%s6429_s3 + $0x78] sm:$0xff]  }
 0x13d   :  { %4575 = vmatmul.mubr.msk.bf16.vlgmr.msra.gmra.mrb[8].mxu1 %vm657_vm8, %v5502_v15  ;;  %v5205_v15 = vld [vmem:[%s6429_s3 + $0x80] sm:$0xff]  }
 0x13e   :  { %4578 = vmatprep.mubr.msk.bf16.mxu1 %vm657_vm8, %v5521_v46  ;;  %4591 = vmatpush3.bf16.msra.mxu1 %v5201_v19 }
 0x13f   :  { %4592 = vmatprep.subr.bf16.mxu1 %v5202_v61 }
 0x142   :  { %4593 = vmatpush3.bf16.msra.mxu1 %v5202_v61 }
 0x143   :  { %4594 = vmatprep.subr.bf16.mxu1 %v5203_v62 }
 0x145   :  { %4579 = vmatmul.mubr.msk.bf16.gmra.mrb[12].mxu1 %vm657_vm8, %v5518_v42 }
 0x146   :  { %4582 = vmatprep.mubr.msk.bf16.mxu1 %vm657_vm8, %v5545_v7  ;;  %4595 = vmatpush3.bf16.msra.mxu1 %v5203_v62 }
 0x147   :  { %4596 = vmatprep.subr.bf16.mxu1 %v5204_v45 }
 0x14a   :  { %4597 = vmatpush3.bf16.msra.mxu1 %v5204_v45 }
 0x14b   :  { %4614 = vmatprep.subr.bf16.mxu1 %v5205_v15 }
 0x14d   :  { %4583 = vmatmul.mubr.msk.bf16.gmra.mrb[16].mxu1 %vm657_vm8, %v5574_v51 }
 0x14e   :  { %4586 = vmatprep.mubr.msk.bf16.mxu1 %vm657_vm8, %v5591_v21 }
 0x155   :  { %4587 = vmatmul.mubr.msk.bf16.gmra.mrb[20].mxu1 %vm657_vm8, %v5589_v17 }
 0x156   :  { %4598 = vmatprep.mubr.msk.bf16.mxu1 %vm657_vm8, %v5500_v11  ;;  %v5208_v11 = vld [vmem:[%s6429_s3 + $0x98] sm:$0xff]  }
 0x15d   :  { %4599 = vmatmul.mubr.msk.bf16.vlgmr.msra.gmra.mrb[8].mxu1 %vm657_vm8, %v5521_v46 }
 0x15e   :  { %4602 = vmatprep.mubr.msk.bf16.mxu1 %vm657_vm8, %v5549_v10  ;;  %4615 = vmatpush3.bf16.msra.mxu1 %v5205_v15 }
 0x15f   :  { %4616 = vmatprep.subr.bf16.mxu1 %v5206_v5 }
 0x162   :  { %4617 = vmatpush3.bf16.msra.mxu1 %v5206_v5 }
 0x163   :  { %4618 = vmatprep.subr.bf16.mxu1 %v5207_v6 }
 0x165   :  { %4603 = vmatmul.mubr.msk.bf16.gmra.mrb[12].mxu1 %vm657_vm8, %v5545_v7 }
 0x166   :  { %4606 = vmatprep.mubr.msk.bf16.mxu1 %vm657_vm8, %v5572_v44  ;;  %4619 = vmatpush3.bf16.msra.mxu1 %v5207_v6 }
 0x167   :  { %4620 = vmatprep.subr.bf16.mxu1 %v5208_v11 }
 0x16a   :  { %4621 = vmatpush3.bf16.msra.mxu1 %v5208_v11 }
 0x16b   :  { %4638 = vmatprep.subr.bf16.mxu1 %v5209_v8 }
 0x16d   :  { %4607 = vmatmul.mubr.msk.bf16.gmra.mrb[16].mxu1 %vm657_vm8, %v5591_v21 }
 0x16e   :  { %4610 = vmatprep.mubr.msk.bf16.mxu1 %vm657_vm8, %v5619_v58 }
 0x175   :  { %4611 = vmatmul.mubr.msk.bf16.gmra.mrb[20].mxu1 %vm657_vm8, %v5617_v28 }
 0x176   :  { %4622 = vmatprep.mubr.msk.bf16.mxu1 %vm657_vm8, %v5536_v0  ;;  %v5212_v0 = vld [vmem:[%s6429_s3 + $0xb8] sm:$0xff]  }
 0x17d   :  { %4623 = vmatmul.mubr.msk.bf16.vlgmr.msra.gmra.mrb[8].mxu1 %vm657_vm8, %v5538_v2  ;;  %v5213_v2 = vld [vmem:[%s6429_s3 + $0xc0] sm:$0xff]  }
 0x17e   :  { %4626 = vmatprep.mubr.msk.bf16.mxu1 %vm657_vm8, %v5563_v33  ;;  %4639 = vmatpush3.bf16.msra.mxu1 %v5209_v8 }
 0x17f   :  { %4640 = vmatprep.subr.bf16.mxu1 %v5210_v9 }
 0x182   :  { %4641 = vmatpush3.bf16.msra.mxu1 %v5210_v9 }
 0x183   :  { %4642 = vmatprep.subr.bf16.mxu1 %v5211_v12 }
 0x185   :  { %4627 = vmatmul.mubr.msk.bf16.gmra.mrb[12].mxu1 %vm657_vm8, %v5581_v4 }
 0x186   :  { %4630 = vmatprep.mubr.msk.bf16.mxu1 %vm657_vm8, %v5604_v43  ;;  %4643 = vmatpush3.bf16.msra.mxu1 %v5211_v12 }
 0x187   :  { %4644 = vmatprep.subr.bf16.mxu1 %v5212_v0 }
 0x18a   :  { %4645 = vmatpush3.bf16.msra.mxu1 %v5212_v0 }
 0x18b   :  { %4662 = vmatprep.subr.bf16.mxu1 %v5213_v2 }
 0x18d   :  { %4631 = vmatmul.mubr.msk.bf16.gmra.mrb[16].mxu1 %vm657_vm8, %v5606_v47 }
 0x18e   :  { %4634 = vmatprep.mubr.msk.bf16.mxu1 %vm657_vm8, %v5732_v18 }
 0x195   :  { %4635 = vmatmul.mubr.msk.bf16.gmra.mrb[20].mxu1 %vm657_vm8, %v5740_v23 }
 0x196   :  { %4646 = vmatprep.mubr.msk.bf16.mxu1 %vm657_vm8, %v5521_v46  ;;  %v5227_v46 = vld [vmem:[%s6431_s5 + $0x30] sm:$0xff]  }
 0x197   :  { %4739 = vmatpush3.bf16.msra.mxu0 %v5227_v46 }
 0x198   :  { %4740 = vmatprep.subr.bf16.mxu0 %v5316_v24 }
 0x19d   :  { %4647 = vmatmul.mubr.msk.bf16.vlgmr.msra.gmra.mrb[8].mxu1 %vm657_vm8, %v5518_v42  ;;  %v5216_v42 = vld [vmem:[%s6429_s3 + $0xd8] sm:$0xff]  }
 0x19e   :  { %4650 = vmatprep.mubr.msk.bf16.mxu1 %vm657_vm8, %v5545_v7  ;;  %4663 = vmatpush3.bf16.msra.mxu1 %v5213_v2 }
 0x19f   :  { %4664 = vmatprep.subr.bf16.mxu1 %v5214_v27 }
 0x1a2   :  { %4665 = vmatpush3.bf16.msra.mxu1 %v5214_v27 }
 0x1a3   :  { %4666 = vmatprep.subr.bf16.mxu1 %v5215_v30 }
 0x1a5   :  { %4651 = vmatmul.mubr.msk.bf16.gmra.mrb[12].mxu1 %vm657_vm8, %v5574_v51 }
 0x1a6   :  { %4654 = vmatprep.mubr.msk.bf16.mxu1 %vm657_vm8, %v5591_v21  ;;  %4667 = vmatpush3.bf16.msra.mxu1 %v5215_v30 }
 0x1a7   :  { %4668 = vmatprep.subr.bf16.mxu1 %v5216_v42 }
 0x1aa   :  { %4669 = vmatpush3.bf16.msra.mxu1 %v5216_v42 }
 0x1ab   :  { %4686 = vmatprep.subr.bf16.mxu1 %v5217_v31 }
 0x1ad   :  { %4655 = vmatmul.mubr.msk.bf16.gmra.mrb[16].mxu1 %vm657_vm8, %v5589_v17 }
 0x1ae   :  { %4658 = vmatprep.mubr.msk.bf16.mxu1 %vm657_vm8, %v5617_v28 }
 0x1b5   :  { %4659 = vmatmul.mubr.msk.bf16.gmra.mrb[20].mxu1 %vm657_vm8, %v5529_v55 }
 0x1b6   :  { %4670 = vmatprep.mubr.msk.bf16.mxu1 %vm657_vm8, %v5549_v10  ;;  %v5220_v10 = vld [vmem:[%s6429_s3 + $0xf8] sm:$0xff]  }
 0x1bd   :  { %4671 = vmatmul.mubr.msk.bf16.vlgmr.msra.gmra.mrb[8].mxu1 %vm657_vm8, %v5545_v7 }
 0x1be   :  { %4674 = vmatprep.mubr.msk.bf16.mxu1 %vm657_vm8, %v5572_v44  ;;  %4687 = vmatpush3.bf16.msra.mxu1 %v5217_v31  ;;  %v5221_v44 = vld [vmem:[%s6429_s3 + $0x100] sm:$0xff]  }
 0x1bf   :  { %4688 = vmatprep.subr.bf16.mxu1 %v5218_v34 }
 0x1c2   :  { %4689 = vmatpush3.bf16.msra.mxu1 %v5218_v34 }
 0x1c3   :  { %4690 = vmatprep.subr.bf16.mxu1 %v5219_v35 }
 0x1c5   :  { %4675 = vmatmul.mubr.msk.bf16.gmra.mrb[12].mxu1 %vm657_vm8, %v5591_v21 }
 0x1c6   :  { %4678 = vmatprep.mubr.msk.bf16.mxu1 %vm657_vm8, %v5619_v58  ;;  %4691 = vmatpush3.bf16.msra.mxu1 %v5219_v35  ;;  %v5231_v35 = vld [vmem:[%s6431_s5 + $0x10] sm:$0xff]  }
 0x1c7   :  { %4692 = vmatprep.subr.bf16.mxu1 %v5220_v10 }
 0x1ca   :  { %4693 = vmatpush3.bf16.msra.mxu1 %v5220_v10 }
 0x1cb   :  { %4710 = vmatprep.subr.bf16.mxu1 %v5221_v44 }
 0x1cd   :  { %4679 = vmatmul.mubr.msk.bf16.gmra.mrb[16].mxu1 %vm657_vm8, %v5617_v28 }
 0x1ce   :  { %4682 = vmatprep.mubr.msk.bf16.mxu1 %vm657_vm8, %v5515_v39  ;;  %v5223_v39 = vld [vmem:[%s6429_s3 + $0x110] sm:$0xff]  }
 0x1d5   :  { %4683 = vmatmul.mubr.msk.bf16.gmra.mrb[20].mxu1 %vm657_vm8, %v5598_v32 }
 0x1d6   :  { %4694 = vmatprep.mubr.msk.bf16.mxu1 %vm657_vm8, %v5563_v33  ;;  %v5224_v33 = vld [vmem:[%s6429_s3 + $0x118] sm:$0xff]  }
 0x1dd   :  { %4695 = vmatmul.mubr.msk.bf16.vlgmr.msra.gmra.mrb[8].mxu1 %vm657_vm8, %v5581_v4 }
 0x1de   :  { %4698 = vmatprep.mubr.msk.bf16.mxu1 %vm657_vm8, %v5604_v43  ;;  %4711 = vmatpush3.bf16.msra.mxu1 %v5221_v44 }
 0x1df   :  { %4712 = vmatprep.subr.bf16.mxu1 %v5222_v36 }
 0x1e2   :  { %4713 = vmatpush3.bf16.msra.mxu1 %v5222_v36 }
 0x1e3   :  { %4714 = vmatprep.subr.bf16.mxu1 %v5223_v39 }
 0x1e5   :  { %4699 = vmatmul.mubr.msk.bf16.gmra.mrb[12].mxu1 %vm657_vm8, %v5606_v47 }
 0x1e6   :  { %4702 = vmatprep.mubr.msk.bf16.mxu1 %vm657_vm8, %v5732_v18  ;;  %4715 = vmatpush3.bf16.msra.mxu1 %v5223_v39 }
 0x1e7   :  { %4716 = vmatprep.subr.bf16.mxu1 %v5224_v33 }
 0x1ea   :  { %4717 = vmatpush3.bf16.msra.mxu1 %v5224_v33 }
 0x1eb   :  { %4906 = vmatprep.subr.bf16.mxu1 %v5316_v24 }
 0x1ed   :  { %4703 = vmatmul.mubr.msk.bf16.gmra.mrb[16].mxu1 %vm657_vm8, %v5740_v23 }
 0x1ee   :  { %4706 = vmatprep.mubr.msk.bf16.mxu1 %vm657_vm8, %v5611_v56 }
 0x1f5   :  { %4707 = vmatmul.mubr.msk.bf16.gmra.mrb[20].mxu1 %vm657_vm8, %v5676_v3 }
 0x1f6   :  { %4718 = vmatprep.mubr.msk.bf16.mxu1 %vm657_vm8, %v5545_v7  ;;  %v5228_v7 = vld [vmem:[%s6431_s5 + $0x38] sm:$0xff]  }
 0x1f7   :  { %4741 = vmatpush3.bf16.msra.mxu0 %v5228_v7 }
 0x1f8   :  { %4762 = vmatprep.subr.bf16.mxu0 %v5316_v24 }
 0x1fd   :  { %4719 = vmatmul.mubr.msk.bf16.vlgmr.msra.gmra.mrb[8].mxu1 %vm657_vm8, %v5574_v51 }
 0x1fe   :  { %4722 = vmatprep.mubr.msk.bf16.mxu1 %vm657_vm8, %v5591_v21 }
 0x205   :  { %4723 = vmatmul.mubr.msk.bf16.gmra.mrb[12].mxu1 %vm657_vm8, %v5589_v17 }
 0x206   :  { %4726 = vmatprep.mubr.msk.bf16.mxu1 %vm657_vm8, %v5617_v28 }
 0x20d   :  { %4727 = vmatmul.mubr.msk.bf16.gmra.mrb[16].mxu1 %vm657_vm8, %v5529_v55  ;;  %v5866_v55 = vld [vmem:[%s6432_s4] ss:$0 sm:$0xff] }
 0x20e   :  { %4730 = vmatprep.mubr.msk.bf16.mxu1 %vm657_vm8, %v5598_v32 }
 0x215   :  { %4731 = vmatmul.mubr.msk.bf16.gmra.mrb[20].mxu1 %vm657_vm8, %v5586_v13 }
 0x216   :  { %4922 = vmatprep.mubr.msk.bf16.mxu1 %vm5317_vm10, %v5316_v24 }
 0x2d0   :  { %v4720_v51 = vpop.f32.mrb[8].mxu1 }
 0x2d1   :  { %v2019_v4 = vadd.f32 %v4720_v51, %v5866_v55  ;;  %v1931_v13 = vpop.f32.mrb[9].mxu1 }
 0x2d2   :  { %v2017_v17 = vadd.f32 %v5866_v55, %v1931_v13  ;;  %v4721_v21 = vpop.f32.mrb[10].mxu1 }
 0x2d3   :  { %v2051_v32 = vmul.f32 0.01, %v2019_v4  ;;  %v2020_v37 = vadd.f32 %v4721_v21, %v5866_v55  ;;  %v1934_v38 = vpop.f32.mrb[11].mxu1  ;;  %vm2035_vm11 = vcmp.ge.f32.partialorder %v2019_v4, 0.0  ;;  %v5232_v21 = vld [vmem:[%s6431_s5 + $0x18] sm:$0xff]  }
 0x2d4   :  { %v2049_v40 = vmul.f32 0.01, %v2017_v17  ;;  %v2018_v41 = vadd.f32 %v5866_v55, %v1934_v38  ;;  %vm2033_vm12 = vcmp.ge.f32.partialorder %v2017_v17, 0.0 }
 0x2d5   :  { %vm2036_vm13 = vcmp.ge.f32.partialorder %v2020_v37, 0.0  ;;  %v2052_v43 = vmul.f32 0.01, %v2020_v37  ;;  %v5872_v49 = vsel %vm2035_vm11, %v2019_v4, %v2051_v32 }
 0x2d6   :  { %vm2034_vm14 = vcmp.ge.f32.partialorder %v2018_v41, 0.0  ;;  %v2050_v47 = vmul.f32 0.01, %v2018_v41  ;;  %v2065_v52 = vsel %vm2033_vm12, %v2017_v17, %v2049_v40 }
 0x2d7   :  { %v5874_v50 = vsel %vm2036_vm13, %v2020_v37, %v2052_v43 }
 0x2d8   :  { %v2082_v53 = vpack.c.bf16 %v5874_v50, %v5872_v49  ;;  %v2066_v54 = vsel %vm2034_vm14, %v2018_v41, %v2050_v47  ;;  %v4724_v56 = vpop.f32.mrb[12].mxu1 }
 0x2d9   :  { %v5878_v29 = vpack.c.bf16 %v2066_v54, %v2065_v52  ;;  %v2023_v28 = vadd.f32 %v4724_v56, %v5866_v55  ;;  %v1947_v57 = vpop.f32.mrb[13].mxu1 }
 0x2da   :  { %v2099_v58 = vunpack.c.l.b16 %v2082_v53  ;;  %v2021_v59 = vadd.f32 %v5866_v55, %v1947_v57  ;;  %v4725_v48 = vpop.f32.mrb[14].mxu1 }
 0x2db   :  { %v2098_v60 = vunpack.c.h.b16 %v5878_v29  ;;  %v2055_v19 = vmul.f32 0.01, %v2023_v28  ;;  %v2024_v61 = vadd.f32 %v4725_v48, %v5866_v55  ;;  %v1950_v62 = vpop.f32.mrb[15].mxu1  ;;  %vm2039_vm15 = vcmp.ge.f32.partialorder %v2023_v28, 0.0 }
 0x2dc   :  { %vm2037_vm0 = vcmp.ge.f32.partialorder %v2021_v59, 0.0  ;;  %v2053_v45 = vmul.f32 0.01, %v2021_v59  ;;  %v2022_v15 = vadd.f32 %v5866_v55, %v1950_v62 }
 0x2dd   :  { %v2130_v1 = vpack.c.b16 %v2099_v58, %v2098_v60  ;;  %vm2040_vm1 = vcmp.ge.f32.partialorder %v2024_v61, 0.0  ;;  %v2056_v3 = vmul.f32 0.01, %v2024_v61  ;;  %v5890_v11 = vsel %vm2039_vm15, %v2023_v28, %v2055_v19 }
 0x2de   :  { %v5888_v5 = vsel %vm2037_vm0, %v2021_v59, %v2053_v45  ;;  %vm2038_vm2 = vcmp.ge.f32.partialorder %v2022_v15, 0.0  ;;  %v2054_v6 = vmul.f32 0.01, %v2022_v15 }
 0x2df   :  { %v4216_v8 = vpack.c.bf16 %v5888_v5, %v5872_v49  ;;  %v5894_v9 = vsel %vm2040_vm1, %v2024_v61, %v2056_v3  ;;  %4743 = vmatmul.mubr.msk.bf16.vlgmr.msra.gmra.mrb[28].mxu0 %vm657_vm8, %v2130_v1  ;;  %v5233_v3 = vld [vmem:[%s6431_s5 + $0x40] sm:$0xff]  }
 0x2e0   :  { %v5899_v12 = vpack.c.bf16 %v5894_v9, %v5890_v11  ;;  %v2070_v0 = vsel %vm2038_vm2, %v2022_v15, %v2054_v6  ;;  %v4728_v2 = vpop.f32.mrb[16].mxu1  ;;  %4763 = vmatpush3.bf16.msra.mxu0 %v5229_v63  ;;  %4746 = vmatprep.mubr.msk.bf16.mxu0 %vm5317_vm10, %v5316_v24  ;;  %v5234_v6 = vld [vmem:[%s6431_s5 + $0x48] sm:$0xff]  }
 0x2e1   :  { %v5907_v16 = vpack.c.bf16 %v2070_v0, %v5888_v5  ;;  %v4214_v18 = vpack.c.bf16 %v2070_v0, %v5874_v50  ;;  %v2027_v20 = vadd.f32 %v4728_v2, %v5866_v55  ;;  %v1963_v22 = vpop.f32.mrb[17].mxu1  ;;  %4764 = vmatprep.subr.bf16.mxu0 %v5316_v24  ;;  %v5237_v5 = vld [vmem:[%s6431_s5 + $0x60] sm:$0xff]   ;;  %v5239_v0 = vld [vmem:[%s6431_s5 + $0x70] sm:$0xff]   ;;  %v5240_v2 = vld [vmem:[%s6431_s5 + $0x78] sm:$0xff]  }
 0x2e2   :  { %v2103_v23 = vunpack.c.l.b16 %v5899_v12  ;;  %v2025_v25 = vadd.f32 %v5866_v55, %v1963_v22  ;;  %v4729_v26 = vpop.f32.mrb[18].mxu1  ;;  %v5245_v22 = vld [vmem:[%s6433_s7 + $0xc0] sm:$0xff]  }
 0x2e3   :  { %v2102_v27 = vunpack.c.h.b16 %v5907_v16  ;;  %v2059_v46 = vmul.f32 0.01, %v2027_v20  ;;  %v2028_v30 = vadd.f32 %v4729_v26, %v5866_v55  ;;  %v1966_v42 = vpop.f32.mrb[19].mxu1  ;;  %vm2043_vm3 = vcmp.ge.f32.partialorder %v2027_v20, 0.0  ;;  %4907 = vmatpush3.bf16.msra.mxu1 %v5245_v22  ;;  %v5248_v26 = vld [vmem:[%s6433_s7 + $0xd0] sm:$0xff]  }
 0x2e4   :  { %vm2041_vm4 = vcmp.ge.f32.partialorder %v2025_v25, 0.0  ;;  %v2057_v31 = vmul.f32 0.01, %v2025_v25  ;;  %v2026_v34 = vadd.f32 %v5866_v55, %v1966_v42  ;;  %4765 = vmatpush3.bf16.msra.mxu0 %v5230_v14  ;;  %4908 = vmatprep.subr.bf16.mxu1 %v5316_v24  ;;  %v5252_v42 = vld [vmem:[%s6433_s7 + $0xe0] sm:$0xff]  }
 0x2e5   :  { %vm2044_vm5 = vcmp.ge.f32.partialorder %v2028_v30, 0.0  ;;  %v2060_v10 = vmul.f32 0.01, %v2028_v30  ;;  %4766 = vmatprep.subr.bf16.mxu0 %v5316_v24  ;;  %v5921_v44 = vpack.c.b16 %v2103_v23, %v2102_v27  ;;  %v5925_v33 = vsel %vm2043_vm3, %v2027_v20, %v2059_v46  ;;  %v5244_v20 = vld [vmem:[%s6433_s7 + $0x58] sm:$0xff]   ;;  %v5246_v23 = vld [vmem:[%s6433_s7 + $0xc8] sm:$0xff]  }
 0x2e6   :  { %v5923_v36 = vsel %vm2041_vm4, %v2025_v25, %v2057_v31  ;;  %vm2042_vm6 = vcmp.ge.f32.partialorder %v2026_v34, 0.0  ;;  %v2058_v39 = vmul.f32 0.01, %v2026_v34  ;;  %v4217_v49 = vpack.c.bf16 %v5925_v33, %v5925_v33  ;;  %v5247_v25 = vld [vmem:[%s6433_s7 + $0x60] sm:$0xff]   ;;  %v5249_v27 = vld [vmem:[%s6433_s7 + $0x68] sm:$0xff]   ;;  %v5250_v46 = vld [vmem:[%s6433_s7 + $0xd8] sm:$0xff]  }
 0x2e7   :  { %v4218_v7 = vpack.c.bf16 %v5923_v36, %v5890_v11  ;;  %v2076_v51 = vsel %vm2044_vm5, %v2028_v30, %v2060_v10  ;;  %4747 = vmatmul.mubr.msk.bf16.gmra.mrb[32].mxu0 %vm657_vm8, %v4214_v18  ;;  %v5243_v18 = vld [vmem:[%s6433_s7 + $0x50] sm:$0xff]   ;;  %4909 = vmatpush3.bf16.msra.mxu1 %v5246_v23  ;;  %v5253_v31 = vld [vmem:[%s6433_s7 + $0x78] sm:$0xff]   ;;  %vm3717_vm5 = vcmask 57344  }
 0x2e8   :  { %v5931_v4 = vpack.c.bf16 %v2076_v51, %v5925_v33  ;;  %v5933_v13 = vsel %vm2042_vm6, %v2026_v34, %v2058_v39  ;;  %v4732_v17 = vpop.f32.mrb[20].mxu1  ;;  %4750 = vmatprep.mubr.msk.bf16.mxu0 %vm5317_vm10, %v5316_v24  ;;  %4767 = vmatpush3.bf16.msra.mxu0 %v5231_v35  ;;  %v4215_v1 = vpack.c.bf16 %v2076_v51, %v2076_v51  ;;  %v5251_v30 = vld [vmem:[%s6433_s7 + $0x70] sm:$0xff]   ;;  %v5254_v34 = vld [vmem:[%s6433_s7 + $0xe8] sm:$0xff]   ;;  %v5258_v33 = vld [vmem:[%s6433_s7 + $0xf8] sm:$0xff]  }
 0x2e9   :  { %v2085_v32 = vpack.c.bf16 %v5933_v13, %v5923_v36  ;;  %v4220_v37 = vpack.c.bf16 %v5933_v13, %v5894_v9  ;;  %v2031_v38 = vadd.f32 %v4732_v17, %v5866_v55  ;;  %v1979_v40 = vpop.f32.mrb[21].mxu1  ;;  %4768 = vmatprep.subr.bf16.mxu0 %v5316_v24  ;;  %v5241_v9 = vld [vmem:[%s6433_s7 + $0x40] sm:$0xff]   ;;  %4910 = vmatprep.subr.bf16.mxu1 %v5316_v24  ;;  %v5256_v39 = vld [vmem:[%s6433_s7 + $0xf0] sm:$0xff]  }
 0x2ea   :  { %v2029_v41 = vadd.f32 %v5866_v55, %v1979_v40  ;;  %v4733_v43 = vpop.f32.mrb[22].mxu1  ;;  %v2107_v60 = vunpack.c.l.b16 %v5931_v4 }
 0x2eb   :  { %v2063_v47 = vmul.f32 0.01, %v2031_v38  ;;  %v2032_v50 = vadd.f32 %v4733_v43, %v5866_v55  ;;  %v1982_v52 = vpop.f32.mrb[23].mxu1  ;;  %vm2047_vm7 = vcmp.ge.f32.partialorder %v2031_v38, 0.0  ;;  %v2106_v19 = vunpack.c.h.b16 %v2085_v32  ;;  %4911 = vmatpush3.bf16.msra.mxu1 %v5248_v26 }
 0x2ec   :  { %v2061_v53 = vmul.f32 0.01, %v2029_v41  ;;  %v2030_v54 = vadd.f32 %v5866_v55, %v1982_v52  ;;  %4769 = vmatpush3.bf16.msra.mxu0 %v5232_v21  ;;  %vm2045_vm9 = vcmp.ge.f32.partialorder %v2029_v41, 0.0  ;;  %4912 = vmatprep.subr.bf16.mxu1 %v5316_v24 }
 0x2ed   :  { %vm2048_vm11 = vcmp.ge.f32.partialorder %v2032_v50, 0.0  ;;  %v2064_v56 = vmul.f32 0.01, %v2032_v50  ;;  %4790 = vmatprep.subr.bf16.mxu0 %v5316_v24  ;;  %v5950_v57 = vsel %vm2047_vm7, %v2031_v38, %v2063_v47  ;;  %v2133_v15 = vpack.c.b16 %v2107_v60, %v2106_v19 }
 0x2ee   :  { %vm2046_vm12 = vcmp.ge.f32.partialorder %v2030_v54, 0.0  ;;  %v2062_v28 = vmul.f32 0.01, %v2030_v54  ;;  %v2077_v59 = vsel %vm2045_vm9, %v2029_v41, %v2061_v53  ;;  %v4219_v11 = vpack.c.bf16 %v5950_v57, %v5950_v57 }
 0x2ef   :  { %v5952_v58 = vsel %vm2048_vm11, %v2032_v50, %v2064_v56  ;;  %4751 = vmatmul.mubr.msk.bf16.gmra.mrb[36].mxu0 %vm657_vm8, %v5899_v12  ;;  %v5235_v12 = vld [vmem:[%s6431_s5 + $0x50] sm:$0xff]   ;;  %4913 = vmatpush3.bf16.msra.mxu1 %v5250_v46 }
 0x2f0   :  { %v2088_v48 = vpack.c.bf16 %v5952_v58, %v5950_v57  ;;  %v2078_v55 = vsel %vm2046_vm12, %v2030_v54, %v2062_v28  ;;  %4754 = vmatprep.mubr.msk.bf16.mxu0 %vm5317_vm10, %v5316_v24  ;;  %v4221_v14 = vpack.c.bf16 %v5952_v58, %v5952_v58  ;;  %4914 = vmatprep.subr.bf16.mxu1 %v5316_v24 }
 0x2f1   :  { %v2087_v61 = vpack.c.bf16 %v2078_v55, %v2077_v59 }
 0x2f2   :  { %v2111_v62 = vunpack.c.l.b16 %v2088_v48 }
 0x2f3   :  { %v2110_v45 = vunpack.c.h.b16 %v2087_v61  ;;  %4915 = vmatpush3.bf16.msra.mxu1 %v5252_v42 }
 0x2f4   :  { %4916 = vmatprep.subr.bf16.mxu1 %v5316_v24 }
 0x2f5   :  { %v2503_v63 = vpack.c.b16 %v2111_v62, %v2110_v45 }
 0x2f7   :  { %4755 = vmatmul.mubr.msk.bf16.gmra.mrb[40].mxu0 %vm657_vm8, %v2133_v15  ;;  %4917 = vmatpush3.bf16.msra.mxu1 %v5254_v34 }
 0x2f8   :  { %4758 = vmatprep.mubr.msk.bf16.mxu0 %vm5317_vm10, %v5316_v24  ;;  %4918 = vmatprep.subr.bf16.mxu1 %v5316_v24 }
 0x2fb   :  { %4919 = vmatpush3.bf16.msra.mxu1 %v5256_v39 }
 0x2fc   :  { %4920 = vmatprep.subr.bf16.mxu1 %v5316_v24 }
 0x2ff   :  { %4759 = vmatmul.mubr.msk.bf16.gmra.mrb[44].mxu0 %vm657_vm8, %v4215_v1  ;;  %4921 = vmatpush3.bf16.msra.mxu1 %v5258_v33 }
 0x300   :  { %4770 = vmatprep.mubr.msk.bf16.mxu0 %vm5317_vm10, %v5316_v24  ;;  %4946 = vmatprep.subr.bf16.mxu1 %v5316_v24 }
 0x307   :  { %4771 = vmatmul.mubr.msk.bf16.vlgmr.msra.gmra.mrb[48].mxu0 %vm657_vm8, %v5878_v29  ;;  %v5236_v29 = vld [vmem:[%s6431_s5 + $0x58] sm:$0xff]  }
 0x308   :  { %4791 = vmatpush3.bf16.msra.mxu0 %v5233_v3  ;;  %4774 = vmatprep.mubr.msk.bf16.mxu0 %vm5317_vm10, %v5316_v24 }
 0x309   :  { %4792 = vmatprep.subr.bf16.mxu0 %v5316_v24 }
 0x30c   :  { %4793 = vmatpush3.bf16.msra.mxu0 %v5234_v6 }
 0x30d   :  { %4794 = vmatprep.subr.bf16.mxu0 %v5316_v24 }
 0x30f   :  { %4775 = vmatmul.mubr.msk.bf16.gmra.mrb[52].mxu0 %vm657_vm8, %v4216_v8  ;;  %v5238_v8 = vld [vmem:[%s6431_s5 + $0x68] sm:$0xff]  }
 0x310   :  { %4778 = vmatprep.mubr.msk.bf16.mxu0 %vm5317_vm10, %v5316_v24  ;;  %4795 = vmatpush3.bf16.msra.mxu0 %v5235_v12 }
 0x311   :  { %4796 = vmatprep.subr.bf16.mxu0 %v5316_v24 }
 0x314   :  { %4797 = vmatpush3.bf16.msra.mxu0 %v5236_v29 }
 0x315   :  { %4818 = vmatprep.subr.bf16.mxu0 %v5316_v24 }
 0x317   :  { %4779 = vmatmul.mubr.msk.bf16.gmra.mrb[56].mxu0 %vm657_vm8, %v5921_v44 }
 0x318   :  { %4782 = vmatprep.mubr.msk.bf16.mxu0 %vm5317_vm10, %v5316_v24 }
 0x31f   :  { %4783 = vmatmul.mubr.msk.bf16.gmra.mrb[60].mxu0 %vm657_vm8, %v2085_v32 }
 0x320   :  { %4786 = vmatprep.mubr.msk.bf16.mxu0 %vm5317_vm10, %v5316_v24 }
 0x327   :  { %4787 = vmatmul.mubr.msk.bf16.gmra.mrb[64].mxu0 %vm657_vm8, %v4217_v49 }
 0x328   :  { %4798 = vmatprep.mubr.msk.bf16.mxu0 %vm5317_vm10, %v5316_v24 }
 0x32f   :  { %4799 = vmatmul.mubr.msk.bf16.vlgmr.msra.gmra.mrb[68].mxu0 %vm657_vm8, %v5907_v16  ;;  %v5242_v16 = vld [vmem:[%s6433_s7 + $0x48] sm:$0xff]  }
 0x330   :  { %4819 = vmatpush3.bf16.msra.mxu0 %v5237_v5  ;;  %4802 = vmatprep.mubr.msk.bf16.mxu0 %vm5317_vm10, %v5316_v24 }
 0x331   :  { %4820 = vmatprep.subr.bf16.mxu0 %v5316_v24 }
 0x334   :  { %4821 = vmatpush3.bf16.msra.mxu0 %v5238_v8 }
 0x335   :  { %4822 = vmatprep.subr.bf16.mxu0 %v5316_v24 }
 0x337   :  { %4803 = vmatmul.mubr.msk.bf16.gmra.mrb[72].mxu0 %vm657_vm8, %v4218_v7 }
 0x338   :  { %4806 = vmatprep.mubr.msk.bf16.mxu0 %vm5317_vm10, %v5316_v24  ;;  %4823 = vmatpush3.bf16.msra.mxu0 %v5239_v0 }
 0x339   :  { %4824 = vmatprep.subr.bf16.mxu0 %v5316_v24 }
 0x33c   :  { %4825 = vmatpush3.bf16.msra.mxu0 %v5240_v2 }
 0x33d   :  { %4846 = vmatprep.subr.bf16.mxu0 %v5316_v24 }
 0x33f   :  { %4807 = vmatmul.mubr.msk.bf16.gmra.mrb[76].mxu0 %vm657_vm8, %v2133_v15 }
 0x340   :  { %4810 = vmatprep.mubr.msk.bf16.mxu0 %vm5317_vm10, %v5316_v24 }
 0x347   :  { %4811 = vmatmul.mubr.msk.bf16.gmra.mrb[80].mxu0 %vm657_vm8, %v2087_v61 }
 0x348   :  { %4814 = vmatprep.mubr.msk.bf16.mxu0 %vm5317_vm10, %v5316_v24 }
 0x34f   :  { %4815 = vmatmul.mubr.msk.bf16.gmra.mrb[84].mxu0 %vm657_vm8, %v4219_v11 }
 0x350   :  { %4826 = vmatprep.mubr.msk.bf16.mxu0 %vm5317_vm10, %v5316_v24 }
 0x357   :  { %4827 = vmatmul.mubr.msk.bf16.vlgmr.msra.gmra.mrb[88].mxu0 %vm657_vm8, %v5921_v44 }
 0x358   :  { %4830 = vmatprep.mubr.msk.bf16.mxu0 %vm5317_vm10, %v5316_v24  ;;  %4847 = vmatpush3.bf16.msra.mxu0 %v5241_v9 }
 0x359   :  { %4848 = vmatprep.subr.bf16.mxu0 %v5316_v24 }
 0x35c   :  { %4849 = vmatpush3.bf16.msra.mxu0 %v5242_v16 }
 0x35d   :  { %4850 = vmatprep.subr.bf16.mxu0 %v5316_v24 }
 0x35f   :  { %4831 = vmatmul.mubr.msk.bf16.gmra.mrb[92].mxu0 %vm657_vm8, %v4220_v37 }
 0x360   :  { %4834 = vmatprep.mubr.msk.bf16.mxu0 %vm5317_vm10, %v5316_v24  ;;  %4851 = vmatpush3.bf16.msra.mxu0 %v5243_v18 }
 0x361   :  { %4852 = vmatprep.subr.bf16.mxu0 %v5316_v24 }
 0x364   :  { %4853 = vmatpush3.bf16.msra.mxu0 %v5244_v20 }
 0x365   :  { %4854 = vmatprep.subr.bf16.mxu0 %v5316_v24 }
 0x367   :  { %4835 = vmatmul.mubr.msk.bf16.gmra.mrb[96].mxu0 %vm657_vm8, %v5931_v4 }
 0x368   :  { %4838 = vmatprep.mubr.msk.bf16.mxu0 %vm5317_vm10, %v5316_v24  ;;  %4855 = vmatpush3.bf16.msra.mxu0 %v5247_v25 }
 0x369   :  { %4856 = vmatprep.subr.bf16.mxu0 %v5316_v24 }
 0x36c   :  { %4857 = vmatpush3.bf16.msra.mxu0 %v5249_v27 }
 0x36d   :  { %4858 = vmatprep.subr.bf16.mxu0 %v5316_v24 }
 0x36f   :  { %4839 = vmatmul.mubr.msk.bf16.gmra.mrb[100].mxu0 %vm657_vm8, %v2503_v63 }
 0x370   :  { %4842 = vmatprep.mubr.msk.bf16.mxu0 %vm5317_vm10, %v5316_v24  ;;  %4859 = vmatpush3.bf16.msra.mxu0 %v5251_v30 }
 0x371   :  { %4860 = vmatprep.subr.bf16.mxu0 %v5316_v24 }
 0x374   :  { %4861 = vmatpush3.bf16.msra.mxu0 %v5253_v31 }
 0x375   :  { %4866 = vmatprep.subr.bf16.mxu0 %v5316_v24 }
 0x377   :  { %4843 = vmatmul.mubr.msk.bf16.gmra.mrb[104].mxu0 %vm657_vm8, %v4221_v14 }
 0x378   :  { %4862 = vmatprep.mubr.msk.bf16.mxu0 %vm5317_vm10, %v5316_v24 }
 0x3b2   :  { %v2208_v35 = vpop.f32.mrb[28].mxu0 }
 0x3b3   :  { %v4744_v10 = vpop.f32.mrb[29].mxu0 }
 0x3b4   :  { %v2211_v44 = vpop.f32.mrb[30].mxu0 }
 0x3b5   :  { %v4745_v36 = vpop.f32.mrb[31].mxu0 }
 0x3ba   :  { %v2216_v7 = vpop.f32.mrb[32].mxu0 }
 0x3bb   :  { %v4748_v51 = vpop.f32.mrb[33].mxu0 }
 0x3bc   :  { %v2219_v4 = vpop.f32.mrb[34].mxu0 }
 0x3bd   :  { %v4749_v13 = vpop.f32.mrb[35].mxu0 }
 0x3c2   :  { %v2224_v17 = vpop.f32.mrb[36].mxu0 }
 0x3c3   :  { %v4752_v21 = vpop.f32.mrb[37].mxu0 }
 0x3c4   :  { %v2227_v32 = vpop.f32.mrb[38].mxu0 }
 0x3c5   :  { %v4753_v37 = vpop.f32.mrb[39].mxu0 }
 0x3ca   :  { %v2232_v38 = vpop.f32.mrb[40].mxu0 }
 0x3cb   :  { %v4756_v40 = vpop.f32.mrb[41].mxu0 }
 0x3cc   :  { %v2235_v41 = vpop.f32.mrb[42].mxu0 }
 0x3cd   :  { %v4757_v43 = vpop.f32.mrb[43].mxu0 }
 0x3d2   :  { %v2240_v47 = vpop.f32.mrb[44].mxu0 }
 0x3d3   :  { %v4760_v50 = vpop.f32.mrb[45].mxu0 }
 0x3d4   :  { %v2243_v52 = vpop.f32.mrb[46].mxu0 }
 0x3d5   :  { %v4761_v53 = vpop.f32.mrb[47].mxu0 }
 0x3da   :  { %v2324_v54 = vpop.f32.mrb[48].mxu0 }
 0x3db   :  { %v2325_v56 = vadd.f32 %v2324_v54, %v2208_v35  ;;  %v4772_v28 = vpop.f32.mrb[49].mxu0 }
 0x3dc   :  { %v2327_v57 = vpop.f32.mrb[50].mxu0 }
 0x3dd   :  { %v2328_v58 = vadd.f32 %v2327_v57, %v2211_v44  ;;  %v4773_v59 = vpop.f32.mrb[51].mxu0 }
 0x3e2   :  { %v2332_v48 = vpop.f32.mrb[52].mxu0 }
 0x3e3   :  { %v2333_v55 = vadd.f32 %v2332_v48, %v2216_v7  ;;  %v4776_v60 = vpop.f32.mrb[53].mxu0 }
 0x3e4   :  { %v2335_v19 = vpop.f32.mrb[54].mxu0  ;;  %v5255_v60 = vld [vmem:[%s6433_s7] sm:$0xff]  }
 0x3e5   :  { %v2336_v61 = vadd.f32 %v2335_v19, %v2219_v4  ;;  %v4777_v62 = vpop.f32.mrb[55].mxu0 }
 0x3ea   :  { %v2340_v45 = vpop.f32.mrb[56].mxu0 }
 0x3eb   :  { %v2341_v15 = vadd.f32 %v2340_v45, %v2224_v17  ;;  %v4780_v63 = vpop.f32.mrb[57].mxu0 }
 0x3ec   :  { %v2343_v1 = vpop.f32.mrb[58].mxu0 }
 0x3ed   :  { %v2344_v3 = vadd.f32 %v2343_v1, %v2227_v32  ;;  %v4781_v6 = vpop.f32.mrb[59].mxu0  ;;  %v5257_v1 = vld [vmem:[%s6433_s7 + $0x8] sm:$0xff]  }
 0x3f2   :  { %v2348_v12 = vpop.f32.mrb[60].mxu0 }
 0x3f3   :  { %v2349_v29 = vadd.f32 %v2348_v12, %v2232_v38  ;;  %v4784_v49 = vpop.f32.mrb[61].mxu0 }
 0x3f4   :  { %v2351_v5 = vpop.f32.mrb[62].mxu0 }
 0x3f5   :  { %v2352_v8 = vadd.f32 %v2351_v5, %v2235_v41  ;;  %v4785_v0 = vpop.f32.mrb[63].mxu0  ;;  %v5259_v5 = vld [vmem:[%s6433_s7 + $0x10] sm:$0xff]  }
 0x3fa   :  { %v2356_v2 = vpop.f32.mrb[64].mxu0 }
 0x3fb   :  { %v2357_v11 = vadd.f32 %v2356_v2, %v2240_v47  ;;  %v4788_v14 = vpop.f32.mrb[65].mxu0 }
 0x3fc   :  { %v2359_v9 = vpop.f32.mrb[66].mxu0 }
 0x3fd   :  { %v4789_v16 = vpop.f32.mrb[67].mxu0 }
 0x3fe   :  { %v5261_v16 = vld [vmem:[%s6433_s7 + $0x18] sm:$0xff]  }
 0x402   :  { %v2445_v18 = vpop.f32.mrb[68].mxu0 }
 0x403   :  { %v2483_v20 = vadd.f32 %v2445_v18, %v2325_v56  ;;  %v4800_v22 = vpop.f32.mrb[69].mxu0  ;;  %v6137_v56 = vld [vmem:[%s6434_s6] ss:$0 sm:$0xff]  ;;  %v5262_v18 = vld [vmem:[%s6433_s7 + $0x148] sm:$0xff]  }
 0x404   :  { %v2448_v23 = vpop.f32.mrb[70].mxu0 }
 0x405   :  { %v2484_v25 = vadd.f32 %v2448_v23, %v2328_v58  ;;  %v4801_v26 = vpop.f32.mrb[71].mxu0 }
 0x406   :  { %v5264_v26 = vld [vmem:[%s6433_s7 + $0x150] sm:$0xff]  }
 0x40a   :  { %v2453_v27 = vpop.f32.mrb[72].mxu0 }
 0x40b   :  { %v2485_v46 = vadd.f32 %v2453_v27, %v2333_v55  ;;  %v4804_v30 = vpop.f32.mrb[73].mxu0 }
 0x40c   :  { %v2456_v42 = vpop.f32.mrb[74].mxu0 }
 0x40d   :  { %v2486_v31 = vadd.f32 %v2456_v42, %v2336_v61  ;;  %v4805_v34 = vpop.f32.mrb[75].mxu0 }
 0x40e   :  { %v5265_v34 = vld [vmem:[%s6433_s7 + $0x28] sm:$0xff]  }
 0x412   :  { %v2461_v35 = vpop.f32.mrb[76].mxu0 }
 0x413   :  { %v2487_v10 = vadd.f32 %v2461_v35, %v2341_v15  ;;  %v4808_v44 = vpop.f32.mrb[77].mxu0  ;;  %v5266_v35 = vld [vmem:[%s6433_s7 + $0x158] sm:$0xff]  }
 0x414   :  { %v2464_v36 = vpop.f32.mrb[78].mxu0 }
 0x415   :  { %v2488_v39 = vadd.f32 %v2464_v36, %v2344_v3  ;;  %v4809_v33 = vpop.f32.mrb[79].mxu0 }
 0x416   :  { %v5267_v33 = vld [vmem:[%s6433_s7 + $0x30] sm:$0xff]  }
 0x41a   :  { %v2469_v7 = vpop.f32.mrb[80].mxu0 }
 0x41b   :  { %v2489_v51 = vadd.f32 %v2469_v7, %v2349_v29  ;;  %v4812_v4 = vpop.f32.mrb[81].mxu0  ;;  %v5268_v7 = vld [vmem:[%s6433_s7 + $0x160] sm:$0xff]  }
 0x41c   :  { %v2472_v13 = vpop.f32.mrb[82].mxu0 }
 0x41d   :  { %v6128_v17 = vadd.f32 %v2472_v13, %v2352_v8  ;;  %v4813_v21 = vpop.f32.mrb[83].mxu0  ;;  %v5260_v8 = vld [vmem:[%s6433_s7 + $0x140] sm:$0xff]  }
 0x41e   :  { %v5269_v21 = vld [vmem:[%s6433_s7 + $0x38] sm:$0xff]  }
 0x422   :  { %v2477_v32 = vpop.f32.mrb[84].mxu0 }
 0x423   :  { %v6130_v37 = vadd.f32 %v2477_v32, %v2357_v11  ;;  %v4816_v38 = vpop.f32.mrb[85].mxu0  ;;  %v5270_v32 = vld [vmem:[%s6433_s7 + $0x168] sm:$0xff]  }
 0x424   :  { %v2480_v40 = vpop.f32.mrb[86].mxu0 }
 0x425   :  { %v4817_v41 = vpop.f32.mrb[87].mxu0  ;;  %v5271_v40 = vld [vmem:[%s6433_s7 + $0x80] sm:$0xff]  }
 0x426   :  { %v5272_v41 = vld [vmem:[%s6433_s7 + $0x170] sm:$0xff]  }
 0x42a   :  { %v2575_v43 = vpop.f32.mrb[88].mxu0 }
 0x42b   :  { %v6132_v47 = vadd.f32 %v2575_v43, %v2483_v20  ;;  %v4828_v50 = vpop.f32.mrb[89].mxu0 }
 0x42c   :  { %v2578_v52 = vpop.f32.mrb[90].mxu0  ;;  %v5273_v50 = vld [vmem:[%s6433_s7 + $0x88] sm:$0xff]  }
 0x42d   :  { %v2614_v53 = vadd.f32 %v2578_v52, %v2484_v25  ;;  %v4829_v54 = vpop.f32.mrb[91].mxu0  ;;  %v5263_v25 = vld [vmem:[%s6433_s7 + $0x20] sm:$0xff]   ;;  %v5274_v52 = vld [vmem:[%s6433_s7 + $0x178] sm:$0xff]  }
 0x42e   :  { %v5275_v54 = vld [vmem:[%s6433_s7 + $0x90] sm:$0xff]  }
 0x42f   :  { %v2630_v28 = vadd.f32 %v6137_v56, %v2614_v53 }
 0x431   :  { %vm2639_vm8 = vcmp.ge.f32.partialorder %v2630_v28, 0.0  ;;  %v2648_v57 = vmul.f32 0.01, %v2630_v28 }
 0x432   :  { %v2583_v58 = vpop.f32.mrb[92].mxu0 }
 0x433   :  { %v2657_v59 = vsel %vm2639_vm8, %v2630_v28, %v2648_v57  ;;  %v2615_v48 = vadd.f32 %v2583_v58, %v2485_v46  ;;  %v4832_v55 = vpop.f32.mrb[93].mxu0  ;;  %v5277_v57 = vld [vmem:[%s6433_s7 + $0x98] sm:$0xff]   ;;  %v5278_v58 = vld [vmem:[%s6433_s7 + $0x1c8] sm:$0xff]  }
 0x434   :  { %v4223_v19 = vpack.c.bf16 %v2657_v59, %v2657_v59  ;;  %v2586_v61 = vpop.f32.mrb[94].mxu0  ;;  %v5279_v59 = vld [vmem:[%s6433_s7 + $0xa0] sm:$0xff]   ;;  %v5281_v55 = vld [vmem:[%s6433_s7 + $0xa8] sm:$0xff]  }
 0x435   :  { %v6144_v62 = vadd.f32 %v6137_v56, %v2615_v48  ;;  %v2616_v45 = vadd.f32 %v2586_v61, %v2486_v31  ;;  %v4833_v15 = vpop.f32.mrb[95].mxu0  ;;  %v5280_v48 = vld [vmem:[%s6433_s7 + $0x1d0] sm:$0xff]   ;;  %v5284_v61 = vld [vmem:[%s6433_s7 + $0x1e0] sm:$0xff]  }
 0x436   :  { %4863 = vmatmul.mubr.bf16.vlgmr.msra.gmra.mrb[108].mxu0 %v4223_v19  ;;  %v5283_v19 = vld [vmem:[%s6433_s7 + $0xb0] sm:$0xff]   ;;  %v5285_v15 = vld [vmem:[%s6433_s7 + $0xb8] sm:$0xff]  }
 0x437   :  { %v2632_v63 = vadd.f32 %v6137_v56, %v2616_v45  ;;  %4867 = vmatpush3.bf16.msra.mxu0 %v5255_v60  ;;  %4882 = vmatprep.mubr.msk.bf16.mxu0 %vm5317_vm10, %v5316_v24  ;;  %v5282_v60 = vld [vmem:[%s6433_s7 + $0x1d8] sm:$0xff]   ;;  %v2649_v45 = vmul.f32 0.01, %v6144_v62  ;;  %vm2640_vm0 = vcmp.ge.f32.partialorder %v6144_v62, 0.0 }
 0x438   :  { %4868 = vmatprep.subr.bf16.mxu0 %v5316_v24 }
 0x439   :  { %vm2641_vm13 = vcmp.ge.f32.partialorder %v2632_v63, 0.0  ;;  %v2650_v3 = vmul.f32 0.01, %v2632_v63 }
 0x43a   :  { %v2591_v6 = vpop.f32.mrb[96].mxu0 }
 0x43b   :  { %v2659_v12 = vsel %vm2641_vm13, %v2632_v63, %v2650_v3  ;;  %v2617_v29 = vadd.f32 %v2591_v6, %v2487_v10  ;;  %4869 = vmatpush3.bf16.msra.mxu0 %v5257_v1  ;;  %v4836_v49 = vpop.f32.mrb[97].mxu0  ;;  %v2629_v10 = vadd.f32 %v6137_v56, %v6132_v47  ;;  %v5286_v63 = vld [vmem:[%s6433_s7 + $0x1e8] sm:$0xff]   ;;  %v2658_v1 = vsel %vm2640_vm0, %v6144_v62, %v2649_v45  ;;  %v5287_v3 = vld [vmem:[%s6433_s7 + $0x100] sm:$0xff]   ;;  %v5288_v6 = vld [vmem:[%s6433_s7 + $0x1f0] sm:$0xff]  }
 0x43c   :  { %v4225_v0 = vpack.c.bf16 %v2659_v12, %v2659_v12  ;;  %v2594_v2 = vpop.f32.mrb[98].mxu0  ;;  %4870 = vmatprep.subr.bf16.mxu0 %v5316_v24  ;;  %v4224_v12 = vpack.c.bf16 %v2658_v1, %v2658_v1  ;;  %v5289_v62 = vld [vmem:[%s6433_s7 + $0x108] sm:$0xff]   ;;  %v5290_v49 = vld [vmem:[%s6433_s7 + $0x1f8] sm:$0xff]  }
 0x43d   :  { %v6161_v11 = vadd.f32 %v6137_v56, %v2617_v29  ;;  %v2618_v14 = vadd.f32 %v2594_v2, %v2488_v39  ;;  %v4837_v9 = vpop.f32.mrb[99].mxu0  ;;  %v2647_v4 = vmul.f32 0.01, %v2629_v10  ;;  %vm2638_vm14 = vcmp.ge.f32.partialorder %v2629_v10, 0.0  ;;  %v5292_v2 = vld [vmem:[%s6433_s7 + $0x118] sm:$0xff]  }
 0x43e   :  { %4923 = vmatmul.mubr.bf16.vlgmr.msra.gmra.mrb[24].mxu1 %v4225_v0  ;;  %v5294_v9 = vld [vmem:[%s6433_s7 + $0x128] sm:$0xff]  }
 0x43f   :  { %4871 = vmatpush3.bf16.msra.mxu0 %v5259_v5  ;;  %4947 = vmatpush3.bf16.msra.mxu1 %v5260_v8  ;;  %v2634_v38 = vadd.f32 %v6137_v56, %v2618_v14  ;;  %v5291_v8 = vld [vmem:[%s6433_s7 + $0x110] sm:$0xff]   ;;  %v5293_v14 = vld [vmem:[%s6433_s7 + $0x120] sm:$0xff]   ;;  %vm2642_vm2 = vcmp.ge.f32.partialorder %v6161_v11, 0.0 }
 0x440   :  { %4872 = vmatprep.subr.bf16.mxu0 %v5316_v24  ;;  %4948 = vmatprep.subr.bf16.mxu1 %v5316_v24 }
 0x441   :  { %4962 = vmatprep.mubr.msk.bf16.mxu1 %vm5317_vm10, %v5316_v24  ;;  %v2652_v47 = vmul.f32 0.01, %v2634_v38  ;;  %vm2643_vm15 = vcmp.ge.f32.partialorder %v2634_v38, 0.0 }
 0x442   :  { %v2599_v20 = vpop.f32.mrb[100].mxu0 }
 0x443   :  { %v2619_v22 = vadd.f32 %v2599_v20, %v2489_v51  ;;  %4873 = vmatpush3.bf16.msra.mxu0 %v5261_v16  ;;  %4949 = vmatpush3.bf16.msra.mxu1 %v5262_v18  ;;  %v4840_v23 = vpop.f32.mrb[101].mxu0  ;;  %v2661_v53 = vsel %vm2643_vm15, %v2634_v38, %v2652_v47  ;;  %v5295_v16 = vld [vmem:[%s6433_s7 + $0x130] sm:$0xff]   ;;  %v2651_v18 = vmul.f32 0.01, %v6161_v11  ;;  %v5296_v20 = vld [vmem:[%s6433_s7 + $0x138] sm:$0xff]  }
 0x444   :  { %v2602_v27 = vpop.f32.mrb[102].mxu0  ;;  %4874 = vmatprep.subr.bf16.mxu0 %v5316_v24  ;;  %4950 = vmatprep.subr.bf16.mxu1 %v5316_v24  ;;  %v4227_v28 = vpack.c.bf16 %v2661_v53, %v2661_v53  ;;  %v5297_v23 = vld [vmem:[%s6433_s7 + $0x180] sm:$0xff]  }
 0x445   :  { %v6182_v46 = vadd.f32 %v6137_v56, %v2619_v22  ;;  %v2620_v30 = vadd.f32 %v2602_v27, %v6128_v17  ;;  %v4841_v42 = vpop.f32.mrb[103].mxu0  ;;  %v2660_v22 = vsel %vm2642_vm2, %v6161_v11, %v2651_v18  ;;  %v5299_v11 = vld [vmem:[%s6433_s7 + $0x190] sm:$0xff]   ;;  %v5300_v27 = vld [vmem:[%s6433_s7 + $0x198] sm:$0xff]  }
 0x446   :  { %v5302_v42 = vld [vmem:[%s6433_s7 + $0x1a8] sm:$0xff]  }
 0x447   :  { %v6186_v31 = vadd.f32 %v6137_v56, %v2620_v30  ;;  %4875 = vmatpush3.bf16.msra.mxu0 %v5263_v25  ;;  %4951 = vmatpush3.bf16.msra.mxu1 %v5264_v26  ;;  %v4226_v25 = vpack.c.bf16 %v2660_v22, %v2660_v22  ;;  %v5298_v26 = vld [vmem:[%s6433_s7 + $0x188] sm:$0xff]   ;;  %v5301_v30 = vld [vmem:[%s6433_s7 + $0x1a0] sm:$0xff]   ;;  %vm2644_vm3 = vcmp.ge.f32.partialorder %v6182_v46, 0.0 }
 0x448   :  { %4876 = vmatprep.subr.bf16.mxu0 %v5316_v24  ;;  %4952 = vmatprep.subr.bf16.mxu1 %v5316_v24 }
 0x449   :  { %v2654_v29 = vmul.f32 0.01, %v6186_v31  ;;  %vm2645_vm1 = vcmp.ge.f32.partialorder %v6186_v31, 0.0 }
 0x44a   :  { %v2607_v44 = vpop.f32.mrb[104].mxu0 }
 0x44b   :  { %v2621_v36 = vadd.f32 %v2607_v44, %v6130_v37  ;;  %4877 = vmatpush3.bf16.msra.mxu0 %v5265_v34  ;;  %4953 = vmatpush3.bf16.msra.mxu1 %v5266_v35  ;;  %v4844_v39 = vpop.f32.mrb[105].mxu0  ;;  %v2656_v37 = vsel %vm2638_vm14, %v2629_v10, %v2647_v4  ;;  %v2663_v5 = vsel %vm2645_vm1, %v6186_v31, %v2654_v29  ;;  %v5303_v31 = vld [vmem:[%s6433_s7 + $0x1b0] sm:$0xff]   ;;  %v2653_v34 = vmul.f32 0.01, %v6182_v46  ;;  %v5304_v35 = vld [vmem:[%s6433_s7 + $0x1b8] sm:$0xff]   ;;  %v5305_v44 = vld [vmem:[%s6433_s7 + $0x200] sm:$0xff]  }
 0x44c   :  { %v2610_v51 = vpop.f32.mrb[106].mxu0  ;;  %4878 = vmatprep.subr.bf16.mxu0 %v5316_v24  ;;  %4954 = vmatprep.subr.bf16.mxu1 %v5316_v24  ;;  %v4222_v43 = vpack.c.bf16 %v2656_v37, %v2656_v37  ;;  %v4229_v0 = vpack.c.bf16 %v2663_v5, %v2663_v5  ;;  %v5306_v39 = vld [vmem:[%s6433_s7 + $0x208] sm:$0xff]   ;;  %v5311_v4 = vld [vmem:[%s6433_s7 + $0x230] sm:$0xff]  }
 0x44d   :  { %v6208_v13 = vadd.f32 %v6137_v56, %v2621_v36  ;;  %v4845_v17 = vpop.f32.mrb[107].mxu0  ;;  %v5276_v56 = vld [vmem:[%s6433_s7 + $0x1c0] sm:$0xff]   ;;  %v2662_v10 = vsel %vm2644_vm3, %v6182_v46, %v2653_v34  ;;  %v5307_v46 = vld [vmem:[%s6433_s7 + $0x210] sm:$0xff]   ;;  %v5310_v51 = vld [vmem:[%s6433_s7 + $0x228] sm:$0xff]  }
 0x44e   :  { %v4228_v36 = vpack.c.bf16 %v2662_v10, %v2662_v10 }
 0x44f   :  { %4879 = vmatpush3.bf16.msra.mxu0 %v5267_v33  ;;  %4955 = vmatpush3.bf16.msra.mxu1 %v5268_v7  ;;  %v5308_v33 = vld [vmem:[%s6433_s7 + $0x218] sm:$0xff]   ;;  %v5309_v7 = vld [vmem:[%s6433_s7 + $0x220] sm:$0xff]   ;;  %v2655_v17 = vmul.f32 0.01, %v6208_v13 }
 0x450   :  { %4880 = vmatprep.subr.bf16.mxu0 %v5316_v24  ;;  %4956 = vmatprep.subr.bf16.mxu1 %v5316_v24 }
 0x453   :  { %4881 = vmatpush3.bf16.msra.mxu0 %v5269_v21  ;;  %4957 = vmatpush3.bf16.msra.mxu1 %v5270_v32  ;;  %v5312_v21 = vld [vmem:[%s6433_s7 + $0x238] sm:$0xff]  }
 0x454   :  { %4886 = vmatprep.subr.bf16.mxu0 %v5316_v24  ;;  %4958 = vmatprep.subr.bf16.mxu1 %v5316_v24 }
 0x456   :  { %4883 = vmatmul.mubr.bf16.vlgmr.msra.gmra.mrb[112].mxu0 %v4222_v43 }
 0x457   :  { %4887 = vmatpush3.bf16.msra.mxu0 %v5271_v40  ;;  %4959 = vmatpush3.bf16.msra.mxu1 %v5272_v41 }
 0x458   :  { %4888 = vmatprep.subr.bf16.mxu0 %v5316_v24  ;;  %4960 = vmatprep.subr.bf16.mxu1 %v5316_v24 }
 0x459   :  { %4902 = vmatprep.mubr.msk.bf16.mxu0 %vm5317_vm10, %v5316_v24 }
 0x45b   :  { %4889 = vmatpush3.bf16.msra.mxu0 %v5273_v50  ;;  %4961 = vmatpush3.bf16.msra.mxu1 %v5274_v52 }
 0x45c   :  { %4890 = vmatprep.subr.bf16.mxu0 %v5316_v24  ;;  %4986 = vmatprep.subr.bf16.mxu1 %v5316_v24 }
 0x45e   :  { %4963 = vmatmul.mubr.bf16.vlgmr.msra.gmra.mrb[28].mxu1 %v4227_v28 }
 0x45f   :  { %4891 = vmatpush3.bf16.msra.mxu0 %v5275_v54  ;;  %4987 = vmatpush3.bf16.msra.mxu1 %v5276_v56 }
 0x460   :  { %4892 = vmatprep.subr.bf16.mxu0 %v5316_v24  ;;  %4988 = vmatprep.subr.bf16.mxu1 %v5316_v24 }
 0x461   :  { %5002 = vmatprep.mubr.msk.bf16.mxu1 %vm5317_vm10, %v5316_v24 }
 0x463   :  { %4893 = vmatpush3.bf16.msra.mxu0 %v5277_v57  ;;  %4989 = vmatpush3.bf16.msra.mxu1 %v5278_v58 }
 0x464   :  { %4894 = vmatprep.subr.bf16.mxu0 %v5316_v24  ;;  %4990 = vmatprep.subr.bf16.mxu1 %v5316_v24 }
 0x467   :  { %4895 = vmatpush3.bf16.msra.mxu0 %v5279_v59  ;;  %4991 = vmatpush3.bf16.msra.mxu1 %v5280_v48 }
 0x468   :  { %4896 = vmatprep.subr.bf16.mxu0 %v5316_v24  ;;  %4992 = vmatprep.subr.bf16.mxu1 %v5316_v24 }
 0x46b   :  { %4897 = vmatpush3.bf16.msra.mxu0 %v5281_v55  ;;  %4993 = vmatpush3.bf16.msra.mxu1 %v5282_v60  ;;  %v5318_v55 = vmov 0   ;;  %v16_v60 = vstv %s6435_s10 }
 0x46c   :  { %4898 = vmatprep.subr.bf16.mxu0 %v5316_v24  ;;  %4994 = vmatprep.subr.bf16.mxu1 %v5316_v24  ;;  %17 = vst [vmem:[#allocation2] sm:$0x1] %v16_v60 }
 0x46d   :  { %5168 = vset.pattern.permute.xlu0 %v5318_v55 }
 0x46f   :  { %4899 = vmatpush3.bf16.msra.mxu0 %v5283_v19  ;;  %4995 = vmatpush3.bf16.msra.mxu1 %v5284_v61 }
 0x470   :  { %4900 = vmatprep.subr.bf16.mxu0 %v5316_v24  ;;  %4996 = vmatprep.subr.bf16.mxu1 %v5316_v24 }
 0x473   :  { %4901 = vmatpush3.bf16.msra.mxu0 %v5285_v15  ;;  %4997 = vmatpush3.bf16.msra.mxu1 %v5286_v63  ;;  %v3666_v19 = vld [vmem:[#allocation2] sm:$0x1] }
 0x474   :  { %4926 = vmatprep.subr.bf16.mxu0 %v5316_v24  ;;  %4998 = vmatprep.subr.bf16.mxu1 %v5316_v24 }
 0x475   :  { %3669 = vperm.xlu0 %5168, %v3666_v19  }
 0x476   :  { %4903 = vmatmul.mubr.bf16.vlgmr.msra.gmra.mrb[116].mxu0 %v4224_v12 }
 0x477   :  { %4927 = vmatpush3.bf16.msra.mxu0 %v5287_v3  ;;  %4999 = vmatpush3.bf16.msra.mxu1 %v5288_v6 }
 0x478   :  { %4928 = vmatprep.subr.bf16.mxu0 %v5316_v24  ;;  %5000 = vmatprep.subr.bf16.mxu1 %v5316_v24 }
 0x479   :  { %4942 = vmatprep.mubr.msk.bf16.mxu0 %vm5317_vm10, %v5316_v24 }
 0x47b   :  { %4929 = vmatpush3.bf16.msra.mxu0 %v5289_v62  ;;  %5001 = vmatpush3.bf16.msra.mxu1 %v5290_v49 }
 0x47c   :  { %4930 = vmatprep.subr.bf16.mxu0 %v5316_v24  ;;  %5026 = vmatprep.subr.bf16.mxu1 %v5316_v24 }
 0x47e   :  { %5003 = vmatmul.mubr.bf16.vlgmr.msra.gmra.mrb[32].mxu1 %v4229_v0 }
 0x47f   :  { %4931 = vmatpush3.bf16.msra.mxu0 %v5291_v8  ;;  %5028 = vmatprep.mubr.msk.bf16.mxu1 %vm5317_vm10, %v5316_v24 }
 0x480   :  { %4932 = vmatprep.subr.bf16.mxu0 %v5316_v24 }
 0x483   :  { %4933 = vmatpush3.bf16.msra.mxu0 %v5292_v2 }
 0x484   :  { %4934 = vmatprep.subr.bf16.mxu0 %v5316_v24 }
 0x487   :  { %4935 = vmatpush3.bf16.msra.mxu0 %v5293_v14 }
 0x488   :  { %4936 = vmatprep.subr.bf16.mxu0 %v5316_v24 }
 0x48b   :  { %4937 = vmatpush3.bf16.msra.mxu0 %v5294_v9 }
 0x48c   :  { %4938 = vmatprep.subr.bf16.mxu0 %v5316_v24 }
 0x48f   :  { %4939 = vmatpush3.bf16.msra.mxu0 %v5295_v16 }
 0x490   :  { %4940 = vmatprep.subr.bf16.mxu0 %v5316_v24 }
 0x493   :  { %4941 = vmatpush3.bf16.msra.mxu0 %v5296_v20 }
 0x494   :  { %4966 = vmatprep.subr.bf16.mxu0 %v5316_v24 }
 0x496   :  { %4943 = vmatmul.mubr.bf16.vlgmr.msra.gmra.mrb[120].mxu0 %v4226_v25 }
 0x497   :  { %4967 = vmatpush3.bf16.msra.mxu0 %v5297_v23  ;;  %4982 = vmatprep.mubr.msk.bf16.mxu0 %vm5317_vm10, %v5316_v24 }
 0x498   :  { %4968 = vmatprep.subr.bf16.mxu0 %v5316_v24 }
 0x49b   :  { %4969 = vmatpush3.bf16.msra.mxu0 %v5298_v26  ;;  %v4213_v26 = vld [vmem:[%s6436_s8] ss:$0 sm:$0xff] }
 0x49c   :  { %4970 = vmatprep.subr.bf16.mxu0 %v5316_v24 }
 0x49f   :  { %4971 = vmatpush3.bf16.msra.mxu0 %v5299_v11 }
 0x4a0   :  { %4972 = vmatprep.subr.bf16.mxu0 %v5316_v24 }
 0x4a3   :  { %4973 = vmatpush3.bf16.msra.mxu0 %v5300_v27 }
 0x4a4   :  { %4974 = vmatprep.subr.bf16.mxu0 %v5316_v24 }
 0x4a7   :  { %4975 = vmatpush3.bf16.msra.mxu0 %v5301_v30 }
 0x4a8   :  { %4976 = vmatprep.subr.bf16.mxu0 %v5316_v24 }
 0x4ab   :  { %4977 = vmatpush3.bf16.msra.mxu0 %v5302_v42 }
 0x4ac   :  { %4978 = vmatprep.subr.bf16.mxu0 %v5316_v24 }
 0x4af   :  { %4979 = vmatpush3.bf16.msra.mxu0 %v5303_v31 }
 0x4b0   :  { %4980 = vmatprep.subr.bf16.mxu0 %v5316_v24 }
 0x4b3   :  { %4981 = vmatpush3.bf16.msra.mxu0 %v5304_v35 }
 0x4b4   :  { %5006 = vmatprep.subr.bf16.mxu0 %v5316_v24 }
 0x4b6   :  { %4983 = vmatmul.mubr.bf16.vlgmr.msra.gmra.mrb[124].mxu0 %v4228_v36  ;;  %v3672_v36 = vlaneseq }
 0x4b7   :  { %5007 = vmatpush3.bf16.msra.mxu0 %v5305_v44  ;;  %5022 = vmatprep.mubr.msk.bf16.mxu0 %vm5317_vm10, %v5316_v24  ;;  %vm2646_vm10 = vcmp.ge.f32.partialorder %v6208_v13, 0.0  ;;  %v3665_v44 = vld [vmem:[%s6437_s9] sm:$0x1] }
 0x4b8   :  { %5008 = vmatprep.subr.bf16.mxu0 %v5316_v24  ;;  %v2664_v32 = vsel %vm2646_vm10, %v6208_v13, %v2655_v17 }
 0x4b9   :  { %v4230_v37 = vpack.c.bf16 %v2664_v32, %v2664_v32 }
 0x4bb   :  { %5009 = vmatpush3.bf16.msra.mxu0 %v5306_v39  ;;  %v3673_v39 = vshrl.u32 %v3672_v36, 7 }
 0x4bc   :  { %5010 = vmatprep.subr.bf16.mxu0 %v5316_v24 }
 0x4bf   :  { %5011 = vmatpush3.bf16.msra.mxu0 %v5307_v46  ;;  %v3674_v46 = vsub.s32 0, %v3673_v39 }
 0x4c0   :  { %5012 = vmatprep.subr.bf16.mxu0 %v5316_v24 }
 0x4c3   :  { %5013 = vmatpush3.bf16.msra.mxu0 %v5308_v33 }
 0x4c4   :  { %5014 = vmatprep.subr.bf16.mxu0 %v5316_v24 }
 0x4c7   :  { %5015 = vmatpush3.bf16.msra.mxu0 %v5309_v7 }
 0x4c8   :  { %5016 = vmatprep.subr.bf16.mxu0 %v5316_v24 }
 0x4cb   :  { %5017 = vmatpush3.bf16.msra.mxu0 %v5310_v51 }
 0x4cc   :  { %5018 = vmatprep.subr.bf16.mxu0 %v5316_v24 }
 0x4cf   :  { %5019 = vmatpush3.bf16.msra.mxu0 %v5311_v4 }
 0x4d0   :  { %5020 = vmatprep.subr.bf16.mxu0 %v5316_v24 }
 0x4d3   :  { %5021 = vmatpush3.bf16.msra.mxu0 %v5312_v21 }
 0x4d6   :  { %5023 = vmatmul.mubr.bf16.vlgmr.msra.gmra.mrb[128].mxu0 %v4230_v37 }
 0x4f4   :  { %v3670_v33 = vpop.permute.xlu0 %3669 }
 0x4f5   :  { %v3675_v7 = vrot.slane %v3670_v33, %v3674_v46 }
 0x509   :  { %v2817_v38 = vpop.f32.mrb[108].mxu0 }
 0x50a   :  { %v4864_v40 = vpop.f32.mrb[109].mxu0 }
 0x50b   :  { %v2820_v41 = vpop.f32.mrb[110].mxu0 }
 0x50c   :  { %v4865_v43 = vpop.f32.mrb[111].mxu0 }
 0x511   :  { %v3116_v47 = vpop.f32.mrb[24].mxu1 }
 0x512   :  { %v4924_v50 = vpop.f32.mrb[25].mxu1 }
 0x513   :  { %v3119_v52 = vpop.f32.mrb[26].mxu1 }
 0x514   :  { %v4925_v53 = vpop.f32.mrb[27].mxu1 }
 0x529   :  { %v2905_v54 = vpop.f32.mrb[112].mxu0 }
 0x52a   :  { %v2906_v56 = vadd.f32 %v2905_v54, %v2817_v38  ;;  %v4884_v28 = vpop.f32.mrb[113].mxu0 }
 0x52b   :  { %v2908_v57 = vpop.f32.mrb[114].mxu0 }
 0x52c   :  { %v4885_v58 = vpop.f32.mrb[115].mxu0 }
 0x531   :  { %v3328_v59 = vpop.f32.mrb[28].mxu1 }
 0x532   :  { %v4964_v24 = vpop.f32.mrb[29].mxu1 }
 0x533   :  { %v3331_v48 = vpop.f32.mrb[30].mxu1 }
 0x534   :  { %v4965_v13 = vpop.f32.mrb[31].mxu1 }
 0x549   :  { %v3010_v61 = vpop.f32.mrb[116].mxu0 }
 0x54a   :  { %v3016_v45 = vadd.f32 %v3010_v61, %v2906_v56  ;;  %v4904_v15 = vpop.f32.mrb[117].mxu0 }
 0x54b   :  { %v3013_v63 = vpop.f32.mrb[118].mxu0 }
 0x54c   :  { %v4905_v1 = vpop.f32.mrb[119].mxu0  ;;  %v3122_v3 = vadd.f32 %v3116_v47, %v3016_v45 }
 0x551   :  { %v3540_v6 = vpop.f32.mrb[32].mxu1 }
 0x552   :  { %v5004_v12 = vpop.f32.mrb[33].mxu1 }
 0x553   :  { %v3543_v29 = vpop.f32.mrb[34].mxu1 }
 0x554   :  { %v5005_v62 = vpop.f32.mrb[35].mxu1 }
 0x569   :  { %v3222_v49 = vpop.f32.mrb[120].mxu0 }
 0x56a   :  { %v3228_v5 = vadd.f32 %v3222_v49, %v3122_v3  ;;  %v4944_v8 = vpop.f32.mrb[121].mxu0 }
 0x56b   :  { %v3225_v0 = vpop.f32.mrb[122].mxu0 }
 0x56c   :  { %v4945_v2 = vpop.f32.mrb[123].mxu0  ;;  %v3334_v14 = vadd.f32 %v3328_v59, %v3228_v5 }
 0x589   :  { %v3434_v9 = vpop.f32.mrb[124].mxu0 }
 0x58a   :  { %v3440_v16 = vadd.f32 %v3434_v9, %v3334_v14  ;;  %v4984_v18 = vpop.f32.mrb[125].mxu0 }
 0x58b   :  { %v3437_v20 = vpop.f32.mrb[126].mxu0 }
 0x58c   :  { %v4985_v22 = vpop.f32.mrb[127].mxu0  ;;  %v3546_v23 = vadd.f32 %v3540_v6, %v3440_v16 }
 0x5a9   :  { %v3646_v25 = vpop.f32.mrb[128].mxu0 }
 0x5aa   :  { %v3652_v11 = vadd.f32 %v3646_v25, %v3546_v23  ;;  %v5024_v27 = vpop.f32.mrb[129].mxu0 }
 0x5ab   :  { %v3649_v30 = vpop.f32.mrb[130].mxu0 }
 0x5ac   :  { %v3660_v42 = vadd.f32 %v4213_v26, %v3652_v11  ;;  %v5025_v31 = vpop.f32.mrb[131].mxu0 }
 0x5ae   :  { %vm3661_vm4 = vcmp.ge.f32.partialorder %v3660_v42, 0.0  ;;  %v3662_v34 = vmul.f32 0.01, %v3660_v42 }
 0x5b0   :  { %v3663_v35 = vsel %vm3661_vm4, %v3660_v42, %v3662_v34 }
 0x5b1   :  { %v3664_v10 = vpack.c.bf16 %v3663_v35, %v3663_v35 }
 0x5b3   :  { %5027 = vmatpush3.bf16.xpose.msra.mxu1 %v3664_v10 }
 0x5ba   :  { %5029 = vmatmul.mubr.bf16.vlgmr.msra.gmra.mrb[36].mxu1 %v3665_v44 }
 0x68d   :  { %v3710_v51 = vpop.f32.mrb[36].mxu1 }
 0x68e   :  { %v3711_v4 = vadd.f32 %v3710_v51, %v3675_v7  ;;  %v5030_v17 = vpop.f32.mrb[37].mxu1 }
 0x68f   :  { %v3713_v21 = vpop.f32.mrb[38].mxu1 }
 0x690   :  { %5313 = vtanh.f32 %v3711_v4  ;;  %v5031_v32 = vpop.f32.mrb[39].mxu1 }
 0x69a   :  { %v5314_v37 = vpop.eup %5313 }
 0x69b   :  { %3718 = vst.msk [vmem:[%s6438_s11] sm:$0x1] %vm3717_vm5, %v5314_v37 }

</bundles_post_ra>
